<compile_context>
chip_gen: v6e
topology: v6e:2x2x1
jax: 0.10.0
libtpu: 0.0.40
codegen_flags: <defaults>
</compile_context>

<pallas_src>
import functools

import jax
import jax.numpy as jnp
from jax import lax
from jax.experimental import pallas as pl
from jax.experimental.pallas import tpu as pltpu


# --------------------------------------------------------------------------- #
# Kernel
# --------------------------------------------------------------------------- #
def hetconv_kernel(x_ref, w3_ref, b_ref, o_ref):
    # x_ref : (1, H+2, W+2, Cin_p)  zero-padded NHWC frame (bf16), resident per batch
    # w3_ref: (3, 3, Cin_p, Cout_p) folded 3x3 weights (bf16)
    # b_ref : (1, Cout_p)           folded bias (fp32)
    # o_ref : (1, TH, W, Cout_p)    output row tile (fp32)
    th, w_out, cop = o_ref.shape[1], o_ref.shape[2], o_ref.shape[3]
    cp = x_ref.shape[3]
    m = th * w_out

    row0 = pl.program_id(1) * th
    if th % 8 == 0:
        row0 = pl.multiple_of(row0, 8)

    # Bias folded into the accumulator init (b = b3 + b1 - b1g).
    acc = jnp.zeros((m, cop), jnp.float32) + b_ref[...]

    # 3x3 conv (centre tap already contains w1 - w1g) as 9 shifted matmuls.
    # Row band hoisted per kh and reused across the 3 kw taps.
    for kh in range(3):
        rows = x_ref[0, pl.ds(row0 + kh, th), :, :]          # (TH, W+2, Cin_p)
        for kw in range(3):
            patch = rows[:, kw:kw + w_out, :].reshape(m, cp)  # (TH*W, Cin_p)
            acc = acc + jnp.dot(patch, w3_ref[kh, kw],
                                preferred_element_type=jnp.float32)

    o_ref[0] = acc.reshape(th, w_out, cop).astype(o_ref.dtype)


# --------------------------------------------------------------------------- #
# Glue helpers
# --------------------------------------------------------------------------- #
def _round_up(x, m):
    return (x + m - 1) // m * m


def _pick_row_tile(h, w):
    """Largest power-of-two divisor tile of H such that TH*W is close to 128 rows."""
    th = h
    while th % 2 == 0 and th * w > 128:
        th //= 2
    return th


def _expand_grouped(wg, cin, p):
    """(Cout, Cin/p, kh, kw) grouped weight -> dense block-diagonal (Cout, Cin, kh, kw)."""
    cout, cin_g = wg.shape[0], wg.shape[1]
    cout_g = cout // p
    dense = jnp.zeros((cout, cin) + wg.shape[2:], wg.dtype)
    for g in range(p):
        dense = dense.at[g * cout_g:(g + 1) * cout_g,
                         g * cin_g:(g + 1) * cin_g].set(
            wg[g * cout_g:(g + 1) * cout_g])
    return dense


def _prepare_weights(w3g, b3, w1, b1, w1g, b1g, cin, p, cin_p, cout_p):
    """Fold (in fp32) the two 1x1 convs into the 3x3 centre tap, pad, cast to bf16."""
    cout = w3g.shape[0]
    w3d = _expand_grouped(w3g.astype(jnp.float32), cin, p)               # (Cout,Cin,3,3)
    w1d = w1.astype(jnp.float32)[:, :, 0, 0]                             # (Cout,Cin)
    w1gd = _expand_grouped(w1g.astype(jnp.float32), cin, p)[:, :, 0, 0]  # (Cout,Cin)

    # Exact identity: conv3x3(w3) + conv1x1(w1) - conv1x1(w1g)
    #              == conv3x3(w3 with centre tap += (w1 - w1g)).
    w3d = w3d.at[:, :, 1, 1].add(w1d - w1gd)
    b_fold = (b3 + b1 - b1g).astype(jnp.float32)

    w3_k = jnp.transpose(w3d, (2, 3, 1, 0))                              # (3,3,Cin,Cout)
    w3_k = jnp.pad(w3_k, ((0, 0), (0, 0),
                          (0, cin_p - cin), (0, cout_p - cout)))
    b_k = jnp.pad(b_fold, (0, cout_p - cout))[None, :]                   # (1, Cout_p)
    return w3_k.astype(jnp.bfloat16), b_k


# --------------------------------------------------------------------------- #
# Wrapper
# --------------------------------------------------------------------------- #
@functools.partial(jax.jit, static_argnames=("p",))
def efficient_hetconv2d(x_nchw, w3g, b3, w1, b1, w1g, b1g, *, p):
    N, Cin, H, W = x_nchw.shape
    Cout = w3g.shape[0]
    Cin_p = _round_up(Cin, 128)
    Cout_p = _round_up(Cout, 128)
    TH = _pick_row_tile(H, W)

    # ---- glue: layout, channel padding (lane-dense), spatial halo pad, bf16 cast ----
    x = jnp.transpose(x_nchw, (0, 2, 3, 1))                              # NCHW -> NHWC
    x = jnp.pad(x, ((0, 0), (1, 1), (1, 1), (0, Cin_p - Cin)))
    x = x.astype(jnp.bfloat16)

    w3_k, b_k = _prepare_weights(w3g, b3, w1, b1, w1g, b1g,
                                 Cin, p, Cin_p, Cout_p)

    # VMEM budget: double-buffered blocks + margin (explicit per perf review).
    blk_bytes = ((H + 2) * (W + 2) * Cin_p * 2        # x frame (bf16)
                 + 9 * Cin_p * Cout_p * 2             # weights (bf16)
                 + Cout_p * 4                         # bias (fp32)
                 + TH * W * Cout_p * 4)               # output tile (fp32)
    vmem_limit = int(min(max(4 * blk_bytes, 32 * 2**20), 60 * 2**20))

    grid = (N, H // TH)
    out_nhwc = pl.pallas_call(
        hetconv_kernel,
        out_shape=jax.ShapeDtypeStruct((N, H, W, Cout_p), jnp.float32),
        grid=grid,
        in_specs=[
            # Full padded frame, indexed by batch only -> stays resident across row tiles.
            pl.BlockSpec((1, H + 2, W + 2, Cin_p), lambda n, r: (n, 0, 0, 0)),
            pl.BlockSpec((3, 3, Cin_p, Cout_p), lambda n, r: (0, 0, 0, 0)),
            pl.BlockSpec((1, Cout_p), lambda n, r: (0, 0)),
        ],
        out_specs=pl.BlockSpec((1, TH, W, Cout_p), lambda n, r: (n, r, 0, 0)),
        compiler_params=pltpu.CompilerParams(
            dimension_semantics=("parallel", "parallel"),
            vmem_limit_bytes=vmem_limit),
    )(x, w3_k, b_k)

    out_nhwc = out_nhwc[:, :, :, :Cout]                                  # drop channel pad
    return jnp.transpose(out_nhwc, (0, 3, 1, 2))                         # NHWC -> NCHW


# --------------------------------------------------------------------------- #
# References
# --------------------------------------------------------------------------- #
def reference_fp32(x, w3g, b3, w1, b1, w1g, b1g, p):
    """Exact fp32 semantics of the PyTorch module."""
    dn = ("NCHW", "OIHW", "NCHW")
    hp = lax.Precision.HIGHEST
    y3 = lax.conv_general_dilated(
        x, w3g, (1, 1), ((1, 1), (1, 1)), dimension_numbers=dn,
        feature_group_count=p, precision=hp) + b3[None, :, None, None]
    y1 = lax.conv_general_dilated(
        x, w1, (1, 1), ((0, 0), (0, 0)), dimension_numbers=dn,
        precision=hp) + b1[None, :, None, None]
    y1g = lax.conv_general_dilated(
        x, w1g, (1, 1), ((0, 0), (0, 0)), dimension_numbers=dn,
        feature_group_count=p, precision=hp) + b1g[None, :, None, None]
    return y3 + y1 - y1g


def reference_matched(x, w3g, b3, w1, b1, w1g, b1g, p):
    """Reference using the same bf16-rounded folded operands the kernel consumes."""
    N, Cin, H, W = x.shape
    Cout = w3g.shape[0]
    cin_p, cout_p = _round_up(Cin, 128), _round_up(Cout, 128)
    w3_k, b_k = _prepare_weights(w3g, b3, w1, b1, w1g, b1g, Cin, p, cin_p, cout_p)
    w_oihw = jnp.transpose(w3_k.astype(jnp.float32)[:, :, :Cin, :Cout], (3, 2, 0, 1))
    xb = x.astype(jnp.bfloat16).astype(jnp.float32)
    dn = ("NCHW", "OIHW", "NCHW")
    y = lax.conv_general_dilated(
        xb, w_oihw, (1, 1), ((1, 1), (1, 1)), dimension_numbers=dn,
        precision=lax.Precision.HIGHEST)
    return y + b_k[0, :Cout][None, :, None, None]


# --------------------------------------------------------------------------- #
# Self-test
# --------------------------------------------------------------------------- #
if __name__ == "__main__":
    # Small shapes consistent with the module: in=8, out=8, p=4 (divisibility holds).
    N, Cin, Cout, H, W, P = 2, 8, 8, 16, 16, 4

    key = jax.random.PRNGKey(0)
    k = jax.random.split(key, 7)
    x = jax.random.normal(k[0], (N, Cin, H, W), jnp.float32)

    # Deterministic synthetic parameters (PyTorch __init__ shapes).
    w3g = 0.1 * jax.random.normal(k[1], (Cout, Cin // P, 3, 3), jnp.float32)
    b3 = 0.1 * jax.random.normal(k[2], (Cout,), jnp.float32)
    w1g = 0.1 * jax.random.normal(k[3], (Cout, Cin // P, 1, 1), jnp.float32)
    b1g = 0.1 * jax.random.normal(k[4], (Cout,), jnp.float32)
    w1 = 0.1 * jax.random.normal(k[5], (Cout, Cin, 1, 1), jnp.float32)
    b1 = 0.1 * jax.random.normal(k[6], (Cout,), jnp.float32)

    out = efficient_hetconv2d(x, w3g, b3, w1, b1, w1g, b1g, p=P)
    out = jax.block_until_ready(out)
    assert out.shape == (N, Cout, H, W), out.shape

    # Tight check against a reference that uses the identical bf16-rounded folded weights.
    ref_m = reference_matched(x, w3g, b3, w1, b1, w1g, b1g, P)
    err_m = float(jnp.max(jnp.abs(out - ref_m)))
    assert jnp.allclose(out, ref_m, atol=2e-3, rtol=2e-3), err_m

    # Semantic check against the exact fp32 module (tolerance covers bf16 operand rounding).
    ref_f = reference_fp32(x, w3g, b3, w1, b1, w1g, b1g, P)
    err_f = float(jnp.max(jnp.abs(out - ref_f)))
    assert jnp.allclose(out, ref_f, atol=5e-2, rtol=5e-2), err_f

    print("KERNEL_OK")
</pallas_src>

<mosaic_0001>
module attributes {stable_mosaic.version = 11 : i64} {
  func.func @hetconv_kernel(%arg0: i32, %arg1: i32, %arg2: memref<1x18x18x128xbf16, #tpu.memory_space<vmem>>, %arg3: memref<3x3x128x128xbf16, #tpu.memory_space<vmem>>, %arg4: memref<1x128xf32, #tpu.memory_space<vmem>>, %arg5: memref<1x8x16x128xf32, #tpu.memory_space<vmem>>) attributes {dimension_semantics = [#tpu.dimension_semantics<parallel>, #tpu.dimension_semantics<parallel>], iteration_bounds = array<i64: 2, 2>, scalar_prefetch = 0 : i64, scratch_operands = 0 : i64, tpu.core_type = #tpu.core_type<tc>, window_params = [{transform_indices = @transform_0, window_bounds = array<i64: 1, 18, 18, 128>}, {pipeline_mode = #tpu.pipeline_mode<synchronous>, transform_indices = @transform_1, window_bounds = array<i64: 3, 3, 128, 128>}, {pipeline_mode = #tpu.pipeline_mode<synchronous>, transform_indices = @transform_2, window_bounds = array<i64: 1, 128>}, {transform_indices = @transform_3, window_bounds = array<i64: 1, 8, 16, 128>}]} {
    %c8_i32 = arith.constant 8 : i32
    %0 = arith.muli %arg1, %c8_i32 : i32
    %1 = tpu.assume_multiple %0, 8 : i32
    %cst = arith.constant 0.000000e+00 : f32
    %2 = vector.broadcast %cst : f32 to vector<128x128xf32>
    %c0 = arith.constant 0 : index
    %c0_0 = arith.constant 0 : index
    %3 = vector.load %arg4[%c0, %c0_0] : memref<1x128xf32, #tpu.memory_space<vmem>>, vector<1x128xf32>
    %4 = vector.broadcast %3 : vector<1x128xf32> to vector<128x128xf32>
    %5 = arith.addf %2, %4 : vector<128x128xf32>
    %c0_i32 = arith.constant 0 : i32
    %6 = arith.addi %1, %c0_i32 : i32
    %c0_1 = arith.constant 0 : index
    %7 = arith.index_cast %6 : i32 to index
    %c0_2 = arith.constant 0 : index
    %c0_3 = arith.constant 0 : index
    %8 = vector.load %arg2[%c0_1, %7, %c0_2, %c0_3] : memref<1x18x18x128xbf16, #tpu.memory_space<vmem>>, vector<1x8x18x128xbf16>
    %9 = vector.shape_cast %8 : vector<1x8x18x128xbf16> to vector<8x18x128xbf16>
    %10 = vector.extract_strided_slice %9 {offsets = [0, 0, 0], sizes = [8, 16, 128], strides = [1, 1, 1]} : vector<8x18x128xbf16> to vector<8x16x128xbf16>
    %11 = vector.shape_cast %10 : vector<8x16x128xbf16> to vector<128x128xbf16>
    %c0_4 = arith.constant 0 : index
    %c0_5 = arith.constant 0 : index
    %c0_6 = arith.constant 0 : index
    %c0_7 = arith.constant 0 : index
    %12 = vector.load %arg3[%c0_4, %c0_5, %c0_6, %c0_7] : memref<3x3x128x128xbf16, #tpu.memory_space<vmem>>, vector<1x1x128x128xbf16>
    %13 = vector.shape_cast %12 : vector<1x1x128x128xbf16> to vector<128x128xbf16>
    %cst_8 = arith.constant dense<0.000000e+00> : vector<128x128xf32>
    %14 = tpu.matmul %11, %13, %cst_8 {dimension_numbers = #tpu.dot_dimension_numbers<[1], [0], [0], [1], [0, 0, 1, 1], [], []>} : vector<128x128xbf16>, vector<128x128xbf16>, vector<128x128xf32> -> vector<128x128xf32>
    %15 = arith.addf %5, %14 : vector<128x128xf32>
    %16 = vector.extract_strided_slice %9 {offsets = [0, 1, 0], sizes = [8, 16, 128], strides = [1, 1, 1]} : vector<8x18x128xbf16> to vector<8x16x128xbf16>
    %17 = vector.shape_cast %16 : vector<8x16x128xbf16> to vector<128x128xbf16>
    %c0_9 = arith.constant 0 : index
    %c1 = arith.constant 1 : index
    %c0_10 = arith.constant 0 : index
    %c0_11 = arith.constant 0 : index
    %18 = vector.load %arg3[%c0_9, %c1, %c0_10, %c0_11] : memref<3x3x128x128xbf16, #tpu.memory_space<vmem>>, vector<1x1x128x128xbf16>
    %19 = vector.shape_cast %18 : vector<1x1x128x128xbf16> to vector<128x128xbf16>
    %cst_12 = arith.constant dense<0.000000e+00> : vector<128x128xf32>
    %20 = tpu.matmul %17, %19, %cst_12 {dimension_numbers = #tpu.dot_dimension_numbers<[1], [0], [0], [1], [0, 0, 1, 1], [], []>} : vector<128x128xbf16>, vector<128x128xbf16>, vector<128x128xf32> -> vector<128x128xf32>
    %21 = arith.addf %15, %20 : vector<128x128xf32>
    %22 = vector.extract_strided_slice %9 {offsets = [0, 2, 0], sizes = [8, 16, 128], strides = [1, 1, 1]} : vector<8x18x128xbf16> to vector<8x16x128xbf16>
    %23 = vector.shape_cast %22 : vector<8x16x128xbf16> to vector<128x128xbf16>
    %c0_13 = arith.constant 0 : index
    %c2 = arith.constant 2 : index
    %c0_14 = arith.constant 0 : index
    %c0_15 = arith.constant 0 : index
    %24 = vector.load %arg3[%c0_13, %c2, %c0_14, %c0_15] : memref<3x3x128x128xbf16, #tpu.memory_space<vmem>>, vector<1x1x128x128xbf16>
    %25 = vector.shape_cast %24 : vector<1x1x128x128xbf16> to vector<128x128xbf16>
    %cst_16 = arith.constant dense<0.000000e+00> : vector<128x128xf32>
    %26 = tpu.matmul %23, %25, %cst_16 {dimension_numbers = #tpu.dot_dimension_numbers<[1], [0], [0], [1], [0, 0, 1, 1], [], []>} : vector<128x128xbf16>, vector<128x128xbf16>, vector<128x128xf32> -> vector<128x128xf32>
    %27 = arith.addf %21, %26 : vector<128x128xf32>
    %c1_i32 = arith.constant 1 : i32
    %28 = arith.addi %1, %c1_i32 : i32
    %c0_17 = arith.constant 0 : index
    %29 = arith.index_cast %28 : i32 to index
    %c0_18 = arith.constant 0 : index
    %c0_19 = arith.constant 0 : index
    %30 = vector.load %arg2[%c0_17, %29, %c0_18, %c0_19] : memref<1x18x18x128xbf16, #tpu.memory_space<vmem>>, vector<1x8x18x128xbf16>
    %31 = vector.shape_cast %30 : vector<1x8x18x128xbf16> to vector<8x18x128xbf16>
    %32 = vector.extract_strided_slice %31 {offsets = [0, 0, 0], sizes = [8, 16, 128], strides = [1, 1, 1]} : vector<8x18x128xbf16> to vector<8x16x128xbf16>
    %33 = vector.shape_cast %32 : vector<8x16x128xbf16> to vector<128x128xbf16>
    %c1_20 = arith.constant 1 : index
    %c0_21 = arith.constant 0 : index
    %c0_22 = arith.constant 0 : index
    %c0_23 = arith.constant 0 : index
    %34 = vector.load %arg3[%c1_20, %c0_21, %c0_22, %c0_23] : memref<3x3x128x128xbf16, #tpu.memory_space<vmem>>, vector<1x1x128x128xbf16>
    %35 = vector.shape_cast %34 : vector<1x1x128x128xbf16> to vector<128x128xbf16>
    %cst_24 = arith.constant dense<0.000000e+00> : vector<128x128xf32>
    %36 = tpu.matmul %33, %35, %cst_24 {dimension_numbers = #tpu.dot_dimension_numbers<[1], [0], [0], [1], [0, 0, 1, 1], [], []>} : vector<128x128xbf16>, vector<128x128xbf16>, vector<128x128xf32> -> vector<128x128xf32>
    %37 = arith.addf %27, %36 : vector<128x128xf32>
    %38 = vector.extract_strided_slice %31 {offsets = [0, 1, 0], sizes = [8, 16, 128], strides = [1, 1, 1]} : vector<8x18x128xbf16> to vector<8x16x128xbf16>
    %39 = vector.shape_cast %38 : vector<8x16x128xbf16> to vector<128x128xbf16>
    %c1_25 = arith.constant 1 : index
    %c1_26 = arith.constant 1 : index
    %c0_27 = arith.constant 0 : index
    %c0_28 = arith.constant 0 : index
    %40 = vector.load %arg3[%c1_25, %c1_26, %c0_27, %c0_28] : memref<3x3x128x128xbf16, #tpu.memory_space<vmem>>, vector<1x1x128x128xbf16>
    %41 = vector.shape_cast %40 : vector<1x1x128x128xbf16> to vector<128x128xbf16>
    %cst_29 = arith.constant dense<0.000000e+00> : vector<128x128xf32>
    %42 = tpu.matmul %39, %41, %cst_29 {dimension_numbers = #tpu.dot_dimension_numbers<[1], [0], [0], [1], [0, 0, 1, 1], [], []>} : vector<128x128xbf16>, vector<128x128xbf16>, vector<128x128xf32> -> vector<128x128xf32>
    %43 = arith.addf %37, %42 : vector<128x128xf32>
    %44 = vector.extract_strided_slice %31 {offsets = [0, 2, 0], sizes = [8, 16, 128], strides = [1, 1, 1]} : vector<8x18x128xbf16> to vector<8x16x128xbf16>
    %45 = vector.shape_cast %44 : vector<8x16x128xbf16> to vector<128x128xbf16>
    %c1_30 = arith.constant 1 : index
    %c2_31 = arith.constant 2 : index
    %c0_32 = arith.constant 0 : index
    %c0_33 = arith.constant 0 : index
    %46 = vector.load %arg3[%c1_30, %c2_31, %c0_32, %c0_33] : memref<3x3x128x128xbf16, #tpu.memory_space<vmem>>, vector<1x1x128x128xbf16>
    %47 = vector.shape_cast %46 : vector<1x1x128x128xbf16> to vector<128x128xbf16>
    %cst_34 = arith.constant dense<0.000000e+00> : vector<128x128xf32>
    %48 = tpu.matmul %45, %47, %cst_34 {dimension_numbers = #tpu.dot_dimension_numbers<[1], [0], [0], [1], [0, 0, 1, 1], [], []>} : vector<128x128xbf16>, vector<128x128xbf16>, vector<128x128xf32> -> vector<128x128xf32>
    %49 = arith.addf %43, %48 : vector<128x128xf32>
    %c2_i32 = arith.constant 2 : i32
    %50 = arith.addi %1, %c2_i32 : i32
    %c0_35 = arith.constant 0 : index
    %51 = arith.index_cast %50 : i32 to index
    %c0_36 = arith.constant 0 : index
    %c0_37 = arith.constant 0 : index
    %52 = vector.load %arg2[%c0_35, %51, %c0_36, %c0_37] : memref<1x18x18x128xbf16, #tpu.memory_space<vmem>>, vector<1x8x18x128xbf16>
    %53 = vector.shape_cast %52 : vector<1x8x18x128xbf16> to vector<8x18x128xbf16>
    %54 = vector.extract_strided_slice %53 {offsets = [0, 0, 0], sizes = [8, 16, 128], strides = [1, 1, 1]} : vector<8x18x128xbf16> to vector<8x16x128xbf16>
    %55 = vector.shape_cast %54 : vector<8x16x128xbf16> to vector<128x128xbf16>
    %c2_38 = arith.constant 2 : index
    %c0_39 = arith.constant 0 : index
    %c0_40 = arith.constant 0 : index
    %c0_41 = arith.constant 0 : index
    %56 = vector.load %arg3[%c2_38, %c0_39, %c0_40, %c0_41] : memref<3x3x128x128xbf16, #tpu.memory_space<vmem>>, vector<1x1x128x128xbf16>
    %57 = vector.shape_cast %56 : vector<1x1x128x128xbf16> to vector<128x128xbf16>
    %cst_42 = arith.constant dense<0.000000e+00> : vector<128x128xf32>
    %58 = tpu.matmul %55, %57, %cst_42 {dimension_numbers = #tpu.dot_dimension_numbers<[1], [0], [0], [1], [0, 0, 1, 1], [], []>} : vector<128x128xbf16>, vector<128x128xbf16>, vector<128x128xf32> -> vector<128x128xf32>
    %59 = arith.addf %49, %58 : vector<128x128xf32>
    %60 = vector.extract_strided_slice %53 {offsets = [0, 1, 0], sizes = [8, 16, 128], strides = [1, 1, 1]} : vector<8x18x128xbf16> to vector<8x16x128xbf16>
    %61 = vector.shape_cast %60 : vector<8x16x128xbf16> to vector<128x128xbf16>
    %c2_43 = arith.constant 2 : index
    %c1_44 = arith.constant 1 : index
    %c0_45 = arith.constant 0 : index
    %c0_46 = arith.constant 0 : index
    %62 = vector.load %arg3[%c2_43, %c1_44, %c0_45, %c0_46] : memref<3x3x128x128xbf16, #tpu.memory_space<vmem>>, vector<1x1x128x128xbf16>
    %63 = vector.shape_cast %62 : vector<1x1x128x128xbf16> to vector<128x128xbf16>
    %cst_47 = arith.constant dense<0.000000e+00> : vector<128x128xf32>
    %64 = tpu.matmul %61, %63, %cst_47 {dimension_numbers = #tpu.dot_dimension_numbers<[1], [0], [0], [1], [0, 0, 1, 1], [], []>} : vector<128x128xbf16>, vector<128x128xbf16>, vector<128x128xf32> -> vector<128x128xf32>
    %65 = arith.addf %59, %64 : vector<128x128xf32>
    %66 = vector.extract_strided_slice %53 {offsets = [0, 2, 0], sizes = [8, 16, 128], strides = [1, 1, 1]} : vector<8x18x128xbf16> to vector<8x16x128xbf16>
    %67 = vector.shape_cast %66 : vector<8x16x128xbf16> to vector<128x128xbf16>
    %c2_48 = arith.constant 2 : index
    %c2_49 = arith.constant 2 : index
    %c0_50 = arith.constant 0 : index
    %c0_51 = arith.constant 0 : index
    %68 = vector.load %arg3[%c2_48, %c2_49, %c0_50, %c0_51] : memref<3x3x128x128xbf16, #tpu.memory_space<vmem>>, vector<1x1x128x128xbf16>
    %69 = vector.shape_cast %68 : vector<1x1x128x128xbf16> to vector<128x128xbf16>
    %cst_52 = arith.constant dense<0.000000e+00> : vector<128x128xf32>
    %70 = tpu.matmul %67, %69, %cst_52 {dimension_numbers = #tpu.dot_dimension_numbers<[1], [0], [0], [1], [0, 0, 1, 1], [], []>} : vector<128x128xbf16>, vector<128x128xbf16>, vector<128x128xf32> -> vector<128x128xf32>
    %71 = arith.addf %65, %70 : vector<128x128xf32>
    %72 = vector.shape_cast %71 : vector<128x128xf32> to vector<8x16x128xf32>
    %c0_53 = arith.constant 0 : index
    %c0_54 = arith.constant 0 : index
    %c0_55 = arith.constant 0 : index
    %c0_56 = arith.constant 0 : index
    %73 = vector.load %arg5[%c0_53, %c0_54, %c0_55, %c0_56] : memref<1x8x16x128xf32, #tpu.memory_space<vmem>>, vector<1x8x16x128xf32>
    %74 = vector.shape_cast %73 : vector<1x8x16x128xf32> to vector<8x16x128xf32>
    %75 = vector.shape_cast %72 : vector<8x16x128xf32> to vector<1x8x16x128xf32>
    tpu.vector_store %arg5[%c0_53, %c0_54, %c0_55, %c0_56], %75 {strides = array<i32>} : memref<1x8x16x128xf32, #tpu.memory_space<vmem>>, vector<1x8x16x128xf32>,
    return
  }
  func.func @transform_0(%arg0: i32, %arg1: i32) -> (i32, i32, i32, i32) {
    %c0_i32 = arith.constant 0 : i32
    %c0_i32_0 = arith.constant 0 : i32
    %c0_i32_1 = arith.constant 0 : i32
    %c0_i32_2 = arith.constant 0 : i32
    return %arg0, %c0_i32, %c0_i32_0, %c0_i32_1 : i32, i32, i32, i32
  }
  func.func @transform_1(%arg0: i32, %arg1: i32) -> (i32, i32, i32, i32) {
    %c0_i32 = arith.constant 0 : i32
    %c0_i32_0 = arith.constant 0 : i32
    %c0_i32_1 = arith.constant 0 : i32
    %c0_i32_2 = arith.constant 0 : i32
    %c0_i32_3 = arith.constant 0 : i32
    return %c0_i32, %c0_i32_0, %c0_i32_1, %c0_i32_2 : i32, i32, i32, i32
  }
  func.func @transform_2(%arg0: i32, %arg1: i32) -> (i32, i32) {
    %c0_i32 = arith.constant 0 : i32
    %c0_i32_0 = arith.constant 0 : i32
    %c0_i32_1 = arith.constant 0 : i32
    return %c0_i32, %c0_i32_0 : i32, i32
  }
  func.func @transform_3(%arg0: i32, %arg1: i32) -> (i32, i32, i32, i32) {
    %c0_i32 = arith.constant 0 : i32
    %c0_i32_0 = arith.constant 0 : i32
    %c0_i32_1 = arith.constant 0 : i32
    return %arg0, %arg1, %c0_i32, %c0_i32_0 : i32, i32, i32, i32
  }
}

</mosaic_0001>

<bundles_post_ra>
// kernel: efficient_hetconv2d.1
= control target key start
LH: loop header
LB: loop body
LE: loop exit
PB: predicated region body
PF: predicated region fallthrough
CT: control target
= control target key end

     0   :  { %s4126_s12 = smov 0   ;;  %s4128_s13 = smov 0   ;;  %s5358_s0 = inlined_call_operand.vmem [shape: bf16[2,18,18,128], index: 0, kind: input, shape index: {}]   ;;  %s5359_s1 = inlined_call_operand.vmem [shape: bf16[3,3,128,128], index: 1, kind: input, shape index: {}]   ;;  %s5360_s2 = inlined_call_operand.vmem [shape: f32[1,128], index: 2, kind: input, shape index: {}]   ;;  %s5361_s3 = inlined_call_operand.vmem [shape: f32[2,16,16,128], index: 3, kind: output, shape index: {}]  }
   0x1   :  { %s4130_s14 = smov 0   ;;  %s4132_s15 = smov 0  }
   0x2   :  { %s4134_s16 = smov 0  }
   0x3 LB: > { %s22_s17 = sadd.s32 1, %s4096_s14  ;;  %s25_s18 = sadd.s32 1, %s4100_s15  ;;  %s4104_s16 = sphi %s4134_s16, %s13_s16   ;;  %s4100_s15 = sphi %s4132_s15, %s5401_s15   ;;  %s4096_s14 = sphi %s4130_s14, %s5400_s14   ;;  %s4092_s13 = sphi %s4128_s13, %s5399_s13   ;;  %s4088_s12 = sphi %s4126_s12, %s5398_s12  }
   0x4   : > { %p23_p0 = scmp.ge.s32.totalorder %s22_s17, 2  ;;  %p3120_p1 = scmp.ge.s32.totalorder %s4104_s16, 1 }
   0x5   : > { %p151_p2 = scmp.lt.s32.totalorder %s4104_s16, 5 }
   0x6   : > { %s5403_s17 = smov (%p23_p0, %s22_s17), 0  ;;  %s5405_s18 = smov (!%p23_p0, %s25_s18), %s4100_s15 }
   0x7   : > { %p152_p3 = pnand %p3120_p1, %p151_p2  ;;  %p27_p4 = scmp.ge.s32.totalorder %s5405_s18, 2 }
   0x9   : > { %s5407_s18 = smov (%p27_p4, %s5405_s18), 0  ;;  %155 = sbr.rel (%p152_p3) target bundleno = 394 (0x18a), region = 32 }
   0xe   : > { %v3970_v0 = vld [vmem:[%s5359_s1 + $0x38] sm:$0xff]   ;;  %p180_p5 = scmp.lt.s32.totalorder %s4092_s13, 1  ;;  %v3972_v2 = vld [vmem:[%s5359_s1 + $0x30] sm:$0xff]   ;;  %v3974_v4 = vld [vmem:[%s5359_s1 + $0x28] sm:$0xff]   ;;  %s3480_s9 = smul.u32 96, %s4088_s12  ;;  %vm871_vm3 = vcmask 1042432  }
   0xf   : > { %v3971_v1 = vld [vmem:[%s5359_s1 + $0x78] sm:$0xff]   ;;  %3625 = vmatprep.subr.bf16.mxu0 %v3970_v0  ;;  %v3973_v3 = vld [vmem:[%s5359_s1 + $0x70] sm:$0xff]   ;;  %v3975_v5 = vld [vmem:[%s5359_s1 + $0x68] sm:$0xff]   ;;  %vm458_vm0 = vsmask.f32 3328  ;;  %vm872_vm4 = vcmask 1046532  }
  0x10   : > { %s5409_s13 = smov (!%p180_p5, %s4092_s13), 1  ;;  %3657 = vmatprep.subr.bf16.mxu1 %v3971_v1  ;;  %3626 = vmatpush3.bf16.msra.mxu0 %v3970_v0  ;;  %v3976_v6 = vld [vmem:[%s5359_s1 + $0x20] sm:$0xff]   ;;  %v3978_v8 = vld [vmem:[%s5359_s1 + $0x18] sm:$0xff]   ;;  %v3980_v10 = vld [vmem:[%s5359_s1 + $0x10] sm:$0xff]   ;;  %vm459_vm1 = vsmask.f32 7440 }
  0x11   : > { %3658 = vmatpush3.bf16.msra.mxu1 %v3971_v1  ;;  %3627 = vmatprep.subr.bf16.mxu0 %v3972_v2  ;;  %s3929_s4 = smul.u32 216, %s5409_s13  ;;  %v3977_v7 = vld [vmem:[%s5359_s1 + $0x60] sm:$0xff]   ;;  %v3979_v9 = vld [vmem:[%s5359_s1 + $0x58] sm:$0xff]   ;;  %v3981_v14 = vld [vmem:[%s5359_s1 + $0x50] sm:$0xff]   ;;  %s3124_s10 = sshll.u32 %s5409_s13, 5 }
  0x12   : > { %3659 = vmatprep.subr.bf16.mxu1 %v3973_v3  ;;  %v3982_v25 = vld [vmem:[%s5359_s1 + $0x8] sm:$0xff]   ;;  %v3984_v34 = vld [vmem:[%s5359_s1] sm:$0xff]   ;;  %vm4243_vm2 = vmor %vm458_vm0, %vm459_vm1 }
  0x13   : > { %s184_s19 = scalar_lea.vmem %s5358_s0, %s3929_s4  ;;  %v3983_v29 = vld [vmem:[%s5359_s1 + $0x48] sm:$0xff]   ;;  %v3985_v40 = vld [vmem:[%s5359_s1 + $0x40] sm:$0xff]   ;;  %v3988_v55 = vld [vmem:[%s5359_s1 + $0xb8] sm:$0xff]  }
  0x14   : > { %3628 = vmatpush3.bf16.msra.mxu0 %v3972_v2  ;;  %s4195_s24 = scalar_lea.vmem %s184_s19, %s3480_s9  ;;  %vm4359_vm5 = vmor %vm871_vm3, %vm872_vm4  ;;  %s3122_s9 = sshll.u32 %s4088_s12, 3 }
  0x15   : > { %3660 = vmatpush3.bf16.msra.mxu1 %v3973_v3  ;;  %3629 = vmatprep.subr.bf16.mxu0 %v3974_v4  ;;  %v4201_v11 = vld [vmem:[%s4195_s24] sm:$0xf]  ;;  %v4204_v12 = vld [vmem:[%s4195_s24 + $0x4] sm:$0xf]  ;;  %v4207_v13 = vld [vmem:[%s4195_s24 + $0x8] sm:$0x1] }
  0x16   : > { %3661 = vmatprep.subr.bf16.mxu1 %v3975_v5  ;;  %v3130_v15 = vcombine.low %v4201_v11, %v4204_v12  ;;  %v462_v16 = vshrl.u32 %v4201_v11, 16  ;;  %v465_v17 = vshll.u32 %v4201_v11, 16  ;;  %v475_v18 = vshrl.u32 %v4204_v12, 16  ;;  %v4218_v19 = vld [vmem:[%s4195_s24 + $0xc] sm:$0xf]  ;;  %p188_p6 = scmp.lt.s32.totalorder %s3122_s9, 15 }
  0x17   : > { %v471_v22 = vshll.u32 %v4204_v12, 16  ;;  %v4222_v24 = vld [vmem:[%s4195_s24 + $0x10] sm:$0xf]  ;;  %v481_v26 = vshll.u32 %v4207_v13, 16  ;;  %v486_v27 = vshrl.u32 %v4218_v19, 16  ;;  %v489_v32 = vshll.u32 %v4218_v19, 16 }
  0x18   : > { %3630 = vmatpush3.bf16.msra.mxu0 %v3974_v4  ;;  %3641 = vmatprep.mubr.bf16.mxu0 %v3130_v15  ;;  %v464_v20 = vrot.slane %v462_v16, 4  ;;  %v467_v21 = vrot.slane %v465_v17, 5  ;;  %v477_v23 = vrot.slane %v475_v18, 4  ;;  %v4230_v28 = vld [vmem:[%s4195_s24 + $0x14] sm:$0x1]  ;;  %v499_v33 = vshrl.u32 %v4222_v24, 16 }
  0x19   : > { %3662 = vmatpush3.bf16.msra.mxu1 %v3975_v5  ;;  %3631 = vmatprep.subr.bf16.mxu0 %v3976_v6  ;;  %v473_v31 = vrot.slane %v471_v22, 5  ;;  %v3178_v35 = vrot.slane %v4201_v11, 9  ;;  %v483_v37 = vrot.slane %v481_v26, 5  ;;  %v883_v38 = vrot.slane %v4222_v24, 5  ;;  %v4268_v60 = vld [vmem:[%s4195_s24 + $0x18] sm:$0xf] }
  0x1a   : > { %3663 = vmatprep.subr.bf16.mxu1 %v3977_v7  ;;  %v468_v30 = vor.u32 %v467_v21, %v464_v20  ;;  %v488_v39 = vrot.slane %v486_v27, 4  ;;  %v491_v43 = vrot.slane %v489_v32, 5  ;;  %v495_v44 = vshll.u32 %v4222_v24, 16  ;;  %v4271_v61 = vld [vmem:[%s4195_s24 + $0x1c] sm:$0xf]  ;;  %v3990_v20 = vld [vmem:[%s5359_s1 + $0xb0] sm:$0xff]  }
  0x1b   : > { %v478_v42 = vor.u32 %v477_v23, %v473_v31  ;;  %v876_v45 = vrot.slane %v4204_v12, 5  ;;  %v879_v46 = vrot.slane %v4207_v13, 5  ;;  %v501_v47 = vrot.slane %v499_v33, 4  ;;  %v4278_v2 = vld [vmem:[%s4195_s24 + $0x20] sm:$0x1]  ;;  %s5411_s9 = smov (!%p188_p6, %s3122_s9), 15 }
  0x1c   : > { %3632 = vmatpush3.bf16.msra.mxu0 %v3976_v6  ;;  %v469_v41 = vrot.slane %v468_v30, 4  ;;  %v505_v48 = vshll.u32 %v4230_v28, 16  ;;  %v492_v51 = vor.u32 %v491_v43, %v488_v39  ;;  %v497_v52 = vrot.slane %v495_v44, 5  ;;  %v4281_v3 = vld [vmem:[%s4195_s24 + $0x24] sm:$0xf]  ;;  %v3989_v6 = vld [vmem:[%s5359_s1 + $0xf8] sm:$0xff]  }
  0x1d   : > { %3664 = vmatpush3.bf16.msra.mxu1 %v3977_v7  ;;  %3633 = vmatprep.subr.bf16.mxu0 %v3978_v8  ;;  %v479_v50 = vrot.slane %v478_v42, 4  ;;  %v3179_v53 = vrot.slane %v4218_v19, 9  ;;  %v4260_v54 = vrot.slane %v883_v38, 4  ;;  %v3131_v63 = vcombine.low %v4218_v19, %v4222_v24  ;;  %v4297_v17 = vld [vmem:[%s4195_s24 + $0x2c] sm:$0x1]  ;;  %v3991_v30 = vld [vmem:[%s5359_s1 + $0xf0] sm:$0xff]  }
  0x1e   : > { %3665 = vmatprep.subr.bf16.mxu1 %v3979_v9  ;;  %v474_v49 = vsel %vm4243_vm2, %v469_v41, %v473_v31  ;;  %v493_v57 = vrot.slane %v492_v51, 4  ;;  %v502_v58 = vor.u32 %v501_v47, %v497_v52  ;;  %v507_v59 = vrot.slane %v505_v48, 5  ;;  %v3994_v47 = vld [vmem:[%s5359_s1 + $0xa8] sm:$0xff]   ;;  %v4009_v13 = vld [vmem:[%s5359_s1 + $0xc0] sm:$0xff]   ;;  %v4012_v19 = vld [vmem:[%s5359_s1 + $0x138] sm:$0xff]   ;;  %s3123_s12 = sshll.u32 %s5411_s9, 1 }
  0x1f   : > { %v484_v56 = vsel %vm4243_vm2, %v479_v50, %v483_v37  ;;  %v510_v0 = vshrl.u32 %v4268_v60, 16  ;;  %v513_v1 = vshll.u32 %v4268_v60, 16  ;;  %v523_v7 = vshrl.u32 %v4271_v61, 16  ;;  %v3995_v51 = vld [vmem:[%s5359_s1 + $0xe8] sm:$0xff]   ;;  %s192_s13 = sadd.s32 %s3124_s10, %s3123_s12 }
  0x20   : > { %3634 = vmatpush3.bf16.msra.mxu0 %v3978_v8  ;;  %v3162_v62 = vcombine.low %v474_v49, %v484_v56  ;;  %v498_v4 = vsel %vm4243_vm2, %v493_v57, %v497_v52  ;;  %v503_v5 = vrot.slane %v502_v58, 4  ;;  %v519_v8 = vshll.u32 %v4271_v61, 16  ;;  %v4326_v57 = vld [vmem:[%s4195_s24 + $0x30] sm:$0xf]  ;;  %v4329_v58 = vld [vmem:[%s4195_s24 + $0x34] sm:$0xf] }
  0x21   : > { %3666 = vmatpush3.bf16.msra.mxu1 %v3979_v9  ;;  %3635 = vmatprep.subr.bf16.mxu0 %v3980_v10  ;;  %v4291_v9 = vld [vmem:[%s4195_s24 + $0x28] sm:$0xf]  ;;  %v515_v15 = vrot.slane %v513_v1, 5  ;;  %v529_v16 = vshll.u32 %v4278_v2, 16  ;;  %v525_v22 = vrot.slane %v523_v7, 4  ;;  %v534_v23 = vshrl.u32 %v4281_v3, 16 }
  0x22   : > { %3667 = vmatprep.subr.bf16.mxu1 %v3981_v14  ;;  %3673 = vmatprep.mubr.bf16.mxu1 %v3162_v62  ;;  %v508_v18 = vsel %vm4243_vm2, %v503_v5, %v507_v59  ;;  %v521_v21 = vrot.slane %v519_v8, 5  ;;  %v547_v32 = vshrl.u32 %v4291_v9, 16  ;;  %v886_v37 = vrot.slane %v4230_v28, 5  ;;  %v4332_v59 = vld [vmem:[%s4195_s24 + $0x38] sm:$0x1]  ;;  %s3125_s11 = sshll.u32 %s192_s13, 3 }
  0x23   : > { %v531_v27 = vrot.slane %v529_v16, 5  ;;  %v536_v33 = vrot.slane %v534_v23, 4  ;;  %v553_v41 = vshll.u32 %v4297_v17, 16  ;;  %v3134_v1 = vcombine.low %v4326_v57, %v4329_v58  ;;  %v4341_v5 = vld [vmem:[%s4195_s24 + $0x3c] sm:$0xf]  ;;  %s5287_s21 = scalar_lea.vmem %s5361_s3, %s3125_s11 }
  0x24   : > { %3636 = vmatpush3.bf16.msra.mxu0 %v3980_v10  ;;  %v3132_v10 = vcombine.low %v4268_v60, %v4271_v61  ;;  %v526_v31 = vor.u32 %v525_v22, %v521_v21  ;;  %v549_v44 = vrot.slane %v547_v32, 4  ;;  %v561_v8 = vshll.u32 %v4326_v57, 16 }
  0x25   : > { %3668 = vmatpush3.bf16.msra.mxu1 %v3981_v14  ;;  %3637 = vmatprep.subr.bf16.mxu0 %v3982_v25  ;;  %v512_v14 = vrot.slane %v510_v0, 4  ;;  %v555_v50 = vrot.slane %v553_v41, 5  ;;  %v3996_v0 = vld [vmem:[%s5359_s1 + $0xa0] sm:$0xff]   ;;  %v585_v32 = vshll.u32 %v4341_v5, 16 }
  0x26   : > { %3669 = vmatprep.subr.bf16.mxu1 %v3983_v29  ;;  %v527_v42 = vrot.slane %v526_v31, 4  ;;  %v563_v22 = vrot.slane %v561_v8, 5  ;;  %v582_v31 = vshrl.u32 %v4341_v5, 16 }
  0x27   : > { %v516_v26 = vor.u32 %v515_v15, %v512_v14  ;;  %v567_v14 = vshll.u32 %v4329_v58, 16  ;;  %v4350_v15 = vld [vmem:[%s4195_s24 + $0x44] sm:$0x1] }
  0x28   : > { %3638 = vmatpush3.bf16.msra.mxu0 %v3982_v25  ;;  %v3163_v25 = vcombine.low %v498_v4, %v508_v18  ;;  %v532_v52 = vsel %vm4243_vm2, %v527_v42, %v531_v27  ;;  %v558_v4 = vshrl.u32 %v4326_v57, 16  ;;  %v584_v41 = vrot.slane %v582_v31, 4 }
  0x29   : > { %3670 = vmatpush3.bf16.msra.mxu1 %v3983_v29  ;;  %3639 = vmatprep.subr.bf16.mxu0 %v3984_v34  ;;  %v537_v29 = vshll.u32 %v4281_v3, 16  ;;  %v517_v39 = vrot.slane %v516_v26, 4  ;;  %v569_v23 = vrot.slane %v567_v14, 5  ;;  %v587_v42 = vrot.slane %v585_v32, 5  ;;  %v4405_v14 = vld [vmem:[%s4195_s24 + $0x50] sm:$0x1] }
  0x2a   : > { %3671 = vmatprep.subr.bf16.mxu1 %v3985_v40  ;;  %v560_v18 = vrot.slane %v558_v4, 4 }
  0x2b   : > { %v522_v48 = vsel %vm4243_vm2, %v517_v39, %v521_v21  ;;  %v577_v21 = vshll.u32 %v4332_v59, 16 }
  0x2c   : > { %3640 = vmatpush3.bf16.msra.mxu0 %v3984_v34  ;;  %v543_v34 = vshll.u32 %v4291_v9, 16  ;;  %v3164_v62 = vcombine.low %v522_v48, %v532_v52 }
  0x2d   : > { %3672 = vmatpush3.bf16.msra.mxu1 %v3985_v40  ;;  %3689 = vmatprep.subr.bf16.mxu0 %v3988_v55  ;;  %v539_v40 = vrot.slane %v537_v29, 5  ;;  %v3997_v29 = vld [vmem:[%s5359_s1 + $0xe0] sm:$0xff]  }
  0x2e   : > { %3721 = vmatprep.subr.bf16.mxu1 %v3989_v6  ;;  %v545_v43 = vrot.slane %v543_v34, 5 }
  0x2f   : > { %3642 = vmatmul.mubr.bf16.vlgmr.msra.gmra.mxu0 %v3131_v63  ;;  %v540_v49 = vor.u32 %v539_v40, %v536_v33  ;;  %v564_v33 = vor.u32 %v563_v22, %v560_v18  ;;  %v4411_v18 = vld [vmem:[%s4195_s24 + $0x58] sm:$0xf]  ;;  %v4419_v22 = vld [vmem:[%s4195_s24 + $0x5c] sm:$0x1] }
  0x30   : > { %3674 = vmatmul.mubr.bf16.vlgmr.msra.gmra.mxu1 %v3163_v25  ;;  %3690 = vmatpush3.bf16.msra.mxu0 %v3988_v55  ;;  %v3133_v55 = vcombine.low %v4281_v3, %v4291_v9  ;;  %v550_v56 = vor.u32 %v549_v44, %v545_v43  ;;  %v4000_v44 = vld [vmem:[%s5359_s1 + $0x98] sm:$0xff]  }
  0x31   : > { %3722 = vmatpush3.bf16.msra.mxu1 %v3989_v6  ;;  %3691 = vmatprep.subr.bf16.mxu0 %v3990_v20  ;;  %v541_v63 = vrot.slane %v540_v49, 4  ;;  %v4344_v6 = vld [vmem:[%s4195_s24 + $0x40] sm:$0xf]  ;;  %v565_v48 = vrot.slane %v564_v33, 4 }
  0x32   : > { %3723 = vmatprep.subr.bf16.mxu1 %v3991_v30  ;;  %3645 = vmatprep.mubr.bf16.mxu0 %v3132_v10  ;;  %v551_v7 = vrot.slane %v550_v56, 4  ;;  %v571_v10 = vshrl.u32 %v4329_v58, 16  ;;  %v595_v39 = vshrl.u32 %v4344_v6, 16  ;;  %v591_v40 = vshll.u32 %v4344_v6, 16 }
  0x33   : > { %3677 = vmatprep.mubr.bf16.mxu1 %v3164_v62  ;;  %v546_v16 = vsel %vm4243_vm2, %v541_v63, %v545_v43  ;;  %v601_v43 = vshll.u32 %v4350_v15, 16  ;;  %v3135_v11 = vcombine.low %v4341_v5, %v4344_v6  ;;  %v588_v56 = vor.u32 %v587_v42, %v584_v41  ;;  %v4394_v63 = vld [vmem:[%s4195_s24 + $0x4c] sm:$0xf] }
  0x34   : > { %3692 = vmatpush3.bf16.msra.mxu0 %v3990_v20  ;;  %v556_v20 = vsel %vm4243_vm2, %v551_v7, %v555_v50  ;;  %v573_v25 = vrot.slane %v571_v10, 4  ;;  %v593_v50 = vrot.slane %v591_v40, 5  ;;  %v597_v52 = vrot.slane %v595_v39, 4  ;;  %v4006_v42 = vld [vmem:[%s5359_s1 + $0x88] sm:$0xff]  }
  0x35   : > { %3724 = vmatpush3.bf16.msra.mxu1 %v3991_v30  ;;  %3693 = vmatprep.subr.bf16.mxu0 %v3994_v47  ;;  %v3165_v27 = vcombine.low %v546_v16, %v556_v20  ;;  %v579_v30 = vrot.slane %v577_v21, 5  ;;  %v603_v62 = vrot.slane %v601_v43, 5  ;;  %v570_v4 = vsel %vm4243_vm2, %v565_v48, %v569_v23  ;;  %v4408_v16 = vld [vmem:[%s4195_s24 + $0x54] sm:$0xf] }
  0x36   : > { %3725 = vmatprep.subr.bf16.mxu1 %v3995_v51  ;;  %v574_v34 = vor.u32 %v573_v25, %v569_v23  ;;  %v598_v8 = vor.u32 %v597_v52, %v593_v50  ;;  %v589_v21 = vrot.slane %v588_v56, 4  ;;  %v619_v25 = vshrl.u32 %v4394_v63, 16 }
  0x37   : > { %3646 = vmatmul.mubr.bf16.gmra.mxu0 %v3133_v55  ;;  %v4001_v55 = vld [vmem:[%s5359_s1 + $0xd8] sm:$0xff]   ;;  %v649_v56 = vshll.u32 %v4419_v22, 16 }
  0x38   : > { %3694 = vmatpush3.bf16.msra.mxu0 %v3994_v47  ;;  %3649 = vmatprep.mubr.bf16.mxu0 %v3134_v1  ;;  %v4380_v47 = vsel %vm4359_vm5, %v3178_v35, %v876_v45  ;;  %v575_v49 = vrot.slane %v574_v34, 4  ;;  %v4002_v35 = vld [vmem:[%s5359_s1 + $0x90] sm:$0xff]   ;;  %v878_v1 = vrot.slane %v876_v45, 4  ;;  %v599_v23 = vrot.slane %v598_v8, 4  ;;  %v4007_v8 = vld [vmem:[%s5359_s1 + $0xc8] sm:$0xff]  }
  0x39   : > { %3678 = vmatmul.mubr.bf16.gmra.mxu1 %v3165_v27  ;;  %3695 = vmatprep.subr.bf16.mxu0 %v3996_v0  ;;  %v4003_v45 = vld [vmem:[%s5359_s1 + $0xd0] sm:$0xff]   ;;  %v615_v27 = vshll.u32 %v4394_v63, 16  ;;  %v594_v31 = vsel %vm4243_vm2, %v589_v21, %v593_v50  ;;  %v3137_v34 = vcombine.low %v4408_v16, %v4411_v18  ;;  %v621_v40 = vrot.slane %v619_v25, 4  ;;  %v4008_v25 = vld [vmem:[%s5359_s1 + $0x80] sm:$0xff]  }
  0x3a   : > { %3726 = vmatpush3.bf16.msra.mxu1 %v3995_v51  ;;  %v4391_v51 = vld [vmem:[%s4195_s24 + $0x48] sm:$0xf]  ;;  %v580_v7 = vsel %vm4243_vm2, %v575_v49, %v579_v30  ;;  %v625_v30 = vshll.u32 %v4405_v14, 16  ;;  %v630_v49 = vshrl.u32 %v4408_v16, 16  ;;  %v633_v50 = vshll.u32 %v4408_v16, 16 }
  0x3b   : > { %3727 = vmatprep.subr.bf16.mxu1 %v3997_v29  ;;  %v3136_v10 = vcombine.low %v4391_v51, %v4394_v63  ;;  %v3166_v12 = vcombine.low %v570_v4, %v580_v7  ;;  %v609_v20 = vshll.u32 %v4391_v51, 16  ;;  %v617_v39 = vrot.slane %v615_v27, 5 }
  0x3c   : > { %3696 = vmatpush3.bf16.msra.mxu0 %v3996_v0  ;;  %v606_v0 = vshrl.u32 %v4391_v51, 16  ;;  %v627_v41 = vrot.slane %v625_v30, 5  ;;  %v632_v4 = vrot.slane %v630_v49, 4  ;;  %v635_v7 = vrot.slane %v633_v50, 5  ;;  %v4460_v30 = vld [vmem:[%s4195_s24 + $0x10] sm:$0xf] }
  0x3d   : > { %3697 = vmatprep.subr.bf16.mxu0 %v4000_v44  ;;  %3681 = vmatprep.mubr.bf16.mxu1 %v3166_v12  ;;  %v611_v33 = vrot.slane %v609_v20, 5  ;;  %v622_v52 = vor.u32 %v621_v40, %v617_v39  ;;  %v4492_v40 = vld [vmem:[%s5359_s1 + $0x178] sm:$0xff]  }
  0x3e   : > { %3728 = vmatpush3.bf16.msra.mxu1 %v3997_v29  ;;  %v608_v32 = vrot.slane %v606_v0, 4  ;;  %v604_v29 = vsel %vm4243_vm2, %v599_v23, %v603_v62  ;;  %v636_v20 = vor.u32 %v635_v7, %v632_v4  ;;  %v651_v23 = vrot.slane %v649_v56, 5  ;;  %v4498_v49 = vld [vmem:[%s4195_s24 + $0x1c] sm:$0xf]  ;;  %v4510_v56 = vld [vmem:[%s4195_s24 + $0x24] sm:$0xf] }
  0x3f   : > { %3650 = vmatmul.mubr.bf16.gmra.mxu0 %v3135_v11  ;;  %3729 = vmatprep.subr.bf16.mxu1 %v4001_v55  ;;  %v3167_v43 = vcombine.low %v594_v31, %v604_v29  ;;  %v643_v11 = vshrl.u32 %v4411_v18, 16  ;;  %v884_v31 = vsel %vm4359_vm5, %v3179_v53, %v883_v38  ;;  %v1408_v38 = vshrl.u32 %v4460_v30, 16 }
  0x40   : > { %3698 = vmatpush3.bf16.msra.mxu0 %v4000_v44  ;;  %3653 = vmatprep.mubr.bf16.mxu0 %v3136_v10  ;;  %v612_v48 = vor.u32 %v611_v33, %v608_v32  ;;  %v639_v44 = vshll.u32 %v4411_v18, 16  ;;  %v623_v10 = vrot.slane %v622_v52, 4  ;;  %v637_v33 = vrot.slane %v636_v20, 4  ;;  %v4014_v52 = vld [vmem:[%s5359_s1 + $0x130] sm:$0xff]   ;;  %v4018_v20 = vld [vmem:[%s5359_s1 + $0x128] sm:$0xff]  }
  0x41   : > { %3699 = vmatprep.subr.bf16.mxu0 %v4002_v35  ;;  %3682 = vmatmul.mubr.bf16.gmra.mxu1 %v3167_v43  ;;  %v645_v21 = vrot.slane %v643_v11, 4  ;;  %v893_v43 = vrot.slane %v4278_v2, 5  ;;  %v3181_v11 = vrot.slane %v4281_v3, 9  ;;  %v1443_v4 = vshrl.u32 %v4510_v56, 16 }
  0x42   : > { %3730 = vmatpush3.bf16.msra.mxu1 %v4001_v55  ;;  %v613_v62 = vrot.slane %v612_v48, 4  ;;  %v880_v55 = vsel %vm4359_vm5, %v878_v1, %v879_v46  ;;  %v641_v12 = vrot.slane %v639_v44, 5  ;;  %v628_v1 = vsel %vm4243_vm2, %v623_v10, %v627_v41 }
  0x43   : > { %3731 = vmatprep.subr.bf16.mxu1 %v4003_v45  ;;  %v3202_v46 = vcombine.low %v4380_v47, %v880_v55  ;;  %v887_v47 = vsel %vm4359_vm5, %v4260_v54, %v886_v37  ;;  %v3180_v41 = vrot.slane %v4268_v60, 9  ;;  %v897_v44 = vrot.slane %v4291_v9, 5 }
  0x44   : > { %3700 = vmatpush3.bf16.msra.mxu0 %v4002_v35  ;;  %v618_v0 = vsel %vm4243_vm2, %v613_v62, %v617_v39  ;;  %v4455_v35 = vld [vmem:[%s4195_s24 + $0xc] sm:$0xf]  ;;  %v646_v27 = vor.u32 %v645_v21, %v641_v12  ;;  %v642_v54 = vsel %vm4243_vm2, %v637_v33, %v641_v12  ;;  %v1432_v60 = vshrl.u32 %v4498_v49, 16  ;;  %v4513_v62 = vld [vmem:[%s4195_s24 + $0x28] sm:$0xf] }
  0x45   : > { %3701 = vmatprep.subr.bf16.mxu0 %v4006_v42  ;;  %v3168_v32 = vcombine.low %v618_v0, %v628_v1  ;;  %v1395_v29 = vshrl.u32 %v4455_v35, 16  ;;  %v1398_v28 = vshll.u32 %v4455_v35, 16  ;;  %v3260_v37 = vcombine.low %v4455_v35, %v4460_v30  ;;  %v4546_v33 = vld [vmem:[%s4195_s24 + $0x3c] sm:$0xf] }
  0x46   : > { %3732 = vmatpush3.bf16.msra.mxu1 %v4003_v45  ;;  %v4474_v45 = vld [vmem:[%s4195_s24 + $0x18] sm:$0xf]  ;;  %v647_v24 = vrot.slane %v646_v27, 4  ;;  %v899_v7 = vrot.slane %v897_v44, 4  ;;  %v1446_v9 = vshll.u32 %v4510_v56, 16  ;;  %v900_v55 = vrot.slane %v4297_v17, 5 }
  0x47   : > { %3654 = vmatmul.mubr.bf16.gmra.mxu0 %v3137_v34  ;;  %3733 = vmatprep.subr.bf16.mxu1 %v4007_v8  ;;  %v1419_v53 = vshrl.u32 %v4474_v45, 16  ;;  %v3203_v34 = vcombine.low %v884_v31, %v887_v47  ;;  %v1422_v50 = vshll.u32 %v4474_v45, 16  ;;  %v1456_v12 = vshrl.u32 %v4513_v62, 16 }
  0x48   : > { %3702 = vmatpush3.bf16.msra.mxu0 %v4006_v42  ;;  %3705 = vmatprep.mubr.bf16.mxu0 %v3202_v46  ;;  %v652_v39 = vsel %vm4243_vm2, %v647_v24, %v651_v23  ;;  %v890_v42 = vrot.slane %v4271_v61, 5  ;;  %v898_v21 = vsel %vm4359_vm5, %v3181_v11, %v897_v44  ;;  %v3261_v17 = vcombine.low %v4474_v45, %v4498_v49  ;;  %v4576_v11 = vld [vmem:[%s4195_s24 + $0x4c] sm:$0xf] }
  0x49   : > { %3685 = vmatprep.mubr.bf16.mxu1 %v3168_v32  ;;  %3703 = vmatprep.subr.bf16.mxu0 %v4008_v25  ;;  %v3169_v48 = vcombine.low %v642_v54, %v652_v39  ;;  %v901_v23 = vsel %vm4359_vm5, %v899_v7, %v900_v55  ;;  %v3182_v46 = vrot.slane %v4326_v57, 9  ;;  %v904_v1 = vrot.slane %v4329_v58, 5  ;;  %v4015_v57 = vld [vmem:[%s5359_s1 + $0x170] sm:$0xff]  }
  0x4a   : > { %3734 = vmatpush3.bf16.msra.mxu1 %v4007_v8  ;;  %v891_v61 = vsel %vm4359_vm5, %v3180_v41, %v890_v42  ;;  %v892_v2 = vrot.slane %v890_v42, 4  ;;  %v4517_v8 = vld [vmem:[%s4195_s24 + $0x30] sm:$0xf]  ;;  %v907_v27 = vrot.slane %v4332_v59, 5  ;;  %v3262_v31 = vcombine.low %v4510_v56, %v4513_v62  ;;  %v4020_v42 = vld [vmem:[%s5359_s1 + $0x120] sm:$0xff]  }
  0x4b   : > { %3735 = vmatprep.subr.bf16.mxu1 %v4009_v13  ;;  %3686 = vmatmul.mubr.bf16.gmra.mxu1 %v3169_v48  ;;  %v1467_v0 = vshrl.u32 %v4517_v8, 16  ;;  %v3205_v47 = vcombine.low %v898_v21, %v901_v23  ;;  %v911_v24 = vrot.slane %v4344_v6, 5  ;;  %v905_v58 = vsel %vm4359_vm5, %v3182_v46, %v904_v1  ;;  %v4019_v6 = vld [vmem:[%s5359_s1 + $0x168] sm:$0xff]   ;;  %v4592_v21 = vld [vmem:[%s4195_s24 + $0x54] sm:$0xf] }
  0x4c   : > { %3704 = vmatpush3.bf16.msra.mxu0 %v4008_v25  ;;  %3737 = vmatprep.mubr.bf16.mxu1 %v3260_v37  ;;  %v894_v3 = vsel %vm4359_vm5, %v892_v2, %v893_v43  ;;  %v4536_v25 = vld [vmem:[%s4195_s24 + $0x34] sm:$0xf]  ;;  %v906_v59 = vrot.slane %v904_v1, 4  ;;  %v1491_v54 = vshrl.u32 %v4546_v33, 16  ;;  %v3183_v37 = vrot.slane %v4341_v5, 9 }
  0x4d   : > { %3753 = vmatprep.subr.bf16.mxu0 %v4012_v19  ;;  %v3204_v10 = vcombine.low %v891_v61, %v894_v3  ;;  %v1480_v32 = vshrl.u32 %v4536_v25, 16  ;;  %v913_v39 = vrot.slane %v911_v24, 4  ;;  %v914_v41 = vrot.slane %v4350_v15, 5  ;;  %v4024_v3 = vld [vmem:[%s5359_s1 + $0x118] sm:$0xff]  }
  0x4e   : > { %3736 = vmatpush3.bf16.msra.mxu1 %v4009_v13  ;;  %v1470_v13 = vshll.u32 %v4517_v8, 16  ;;  %v908_v5 = vsel %vm4359_vm5, %v906_v59, %v907_v27  ;;  %v1494_v43 = vshll.u32 %v4546_v33, 16  ;;  %v3263_v44 = vcombine.low %v4517_v8, %v4536_v25  ;;  %v4600_v23 = vld [vmem:[%s4195_s24 + $0x58] sm:$0xf] }
  0x4f   : > { %3706 = vmatmul.mubr.bf16.vlgmr.msra.gmra.mxu0 %v3203_v34  ;;  %3785 = vmatprep.subr.bf16.mxu1 %v4492_v40  ;;  %v4560_v34 = vld [vmem:[%s4195_s24 + $0x48] sm:$0xf]  ;;  %v3206_v15 = vcombine.low %v905_v58, %v908_v5  ;;  %v912_v61 = vsel %vm4359_vm5, %v3183_v37, %v911_v24  ;;  %v3184_v7 = vrot.slane %v4391_v51, 9  ;;  %v918_v55 = vrot.slane %v4394_v63, 5  ;;  %v4021_v51 = vld [vmem:[%s5359_s1 + $0x160] sm:$0xff]  }
  0x50   : > { %3754 = vmatpush3.bf16.msra.mxu0 %v4012_v19  ;;  %3709 = vmatprep.mubr.bf16.mxu0 %v3204_v10  ;;  %v4549_v19 = vld [vmem:[%s4195_s24 + $0x40] sm:$0xf]  ;;  %v1518_v2 = vshll.u32 %v4560_v34, 16  ;;  %v921_v10 = vrot.slane %v4405_v14, 5  ;;  %v1539_v46 = vshrl.u32 %v4592_v21, 16  ;;  %v925_v63 = vrot.slane %v4411_v18, 5 }
  0x51   : > { %3755 = vmatprep.subr.bf16.mxu0 %v4014_v52  ;;  %v1504_v48 = vshrl.u32 %v4549_v19, 16  ;;  %v928_v14 = vrot.slane %v4419_v22, 5  ;;  %v3264_v1 = vcombine.low %v4546_v33, %v4549_v19  ;;  %v920_v27 = vrot.slane %v918_v55, 4  ;;  %v4614_v24 = vld [vmem:[%s4195_s24 + $0x64] sm:$0xf]  ;;  %v4026_v22 = vld [vmem:[%s5359_s1 + $0x110] sm:$0xff]  }
  0x52   : > { %v1552_v18 = vshrl.u32 %v4600_v23, 16  ;;  %v927_v59 = vrot.slane %v925_v63, 4 }
  0x53   : > { %3738 = vmatmul.mubr.bf16.vlgmr.msra.gmra.mxu1 %v3261_v17  ;;  %v3185_v17 = vrot.slane %v4408_v16, 9  ;;  %v919_v16 = vsel %vm4359_vm5, %v3184_v7, %v918_v55  ;;  %v4025_v55 = vld [vmem:[%s5359_s1 + $0x158] sm:$0xff]  }
  0x54   : > { %3756 = vmatpush3.bf16.msra.mxu0 %v4014_v52  ;;  %v1515_v52 = vshrl.u32 %v4560_v34, 16  ;;  %3786 = vmatpush3.bf16.msra.mxu1 %v4492_v40  ;;  %v915_v40 = vsel %vm4359_vm5, %v913_v39, %v914_v41 }
  0x55   : > { %3757 = vmatprep.subr.bf16.mxu0 %v4018_v20  ;;  %3741 = vmatprep.mubr.bf16.mxu1 %v3262_v31  ;;  %v1542_v31 = vshll.u32 %v4592_v21, 16  ;;  %v3207_v58 = vcombine.low %v912_v61, %v915_v40  ;;  %v4624_v37 = vsel %vm4359_vm5, %v3185_v17, %v925_v63  ;;  %v3266_v61 = vcombine.low %v4592_v21, %v4600_v23 }
  0x56   : > { %3787 = vmatprep.subr.bf16.mxu1 %v4015_v57  ;;  %v1576_v40 = vshrl.u32 %v4614_v24, 16  ;;  %v1400_v17 = vrot.slane %v1398_v28, 5  ;;  %v1404_v63 = vshll.u32 %v4460_v30, 16 }
  0x57   : > { %3710 = vmatmul.mubr.bf16.gmra.mxu0 %v3205_v47  ;;  %v4611_v47 = vld [vmem:[%s4195_s24 + $0x60] sm:$0xf] }
  0x58   : > { %3758 = vmatpush3.bf16.msra.mxu0 %v4018_v20  ;;  %3713 = vmatprep.mubr.bf16.mxu0 %v3206_v15  ;;  %v1528_v20 = vshrl.u32 %v4576_v11, 16  ;;  %v1563_v39 = vshrl.u32 %v4611_v47, 16  ;;  %v1566_v41 = vshll.u32 %v4611_v47, 16  ;;  %v929_v15 = vsel %vm4359_vm5, %v927_v59, %v928_v14  ;;  %v4030_v59 = vld [vmem:[%s5359_s1 + $0x108] sm:$0xff]  }
  0x59   : > { %3759 = vmatprep.subr.bf16.mxu0 %v4020_v42  ;;  %3788 = vmatpush3.bf16.msra.mxu1 %v4015_v57  ;;  %v922_v57 = vsel %vm4359_vm5, %v920_v27, %v921_v10  ;;  %v3267_v7 = vcombine.low %v4611_v47, %v4614_v24  ;;  %v3222_v10 = vld [vmem:[%s4195_s24 + $0x14] sm:$0x1]  ;;  %v1410_v14 = vrot.slane %v1408_v38, 4  ;;  %v1424_v38 = vrot.slane %v1422_v50, 5 }
  0x5a   : > { %3789 = vmatprep.subr.bf16.mxu1 %v4019_v6  ;;  %v3208_v5 = vcombine.low %v919_v16, %v922_v57  ;;  %v1806_v16 = vrot.slane %v4460_v30, 5  ;;  %v1809_v27 = vrot.slane %v3222_v10, 5  ;;  %v1406_v57 = vrot.slane %v1404_v63, 5 }
  0x5b   : > { %3742 = vmatmul.mubr.bf16.gmra.mxu1 %v3263_v44  ;;  %v1397_v44 = vrot.slane %v1395_v29, 4  ;;  %v1414_v29 = vshll.u32 %v3222_v10, 16  ;;  %v1434_v50 = vrot.slane %v1432_v60, 4 }
  0x5c   : > { %3760 = vmatpush3.bf16.msra.mxu0 %v4020_v42  ;;  %v3265_v42 = vcombine.low %v4560_v34, %v4576_v11  ;;  %3745 = vmatprep.mubr.bf16.mxu1 %v3264_v1  ;;  %v3308_v1 = vrot.slane %v4455_v35, 9  ;;  %v4027_v35 = vld [vmem:[%s5359_s1 + $0x150] sm:$0xff]   ;;  %v1411_v10 = vor.u32 %v1410_v14, %v1406_v57 }
  0x5d   : > { %3761 = vmatprep.subr.bf16.mxu0 %v4024_v3  ;;  %3790 = vmatpush3.bf16.msra.mxu1 %v4019_v6  ;;  %v3209_v6 = vcombine.low %v4624_v37, %v929_v15  ;;  %v1401_v28 = vor.u32 %v1400_v17, %v1397_v44  ;;  %v1421_v37 = vrot.slane %v1419_v53, 4  ;;  %v1416_v30 = vrot.slane %v1414_v29, 5 }
  0x5e   : > { %3791 = vmatprep.subr.bf16.mxu1 %v4021_v51  ;;  %v1428_v15 = vshll.u32 %v4498_v49, 16 }
  0x5f   : > { %3714 = vmatmul.mubr.bf16.gmra.mxu0 %v3207_v58  ;;  %v3225_v58 = vld [vmem:[%s4195_s24 + $0x20] sm:$0x1]  ;;  %v1402_v44 = vrot.slane %v1401_v28, 4  ;;  %v1425_v53 = vor.u32 %v1424_v38, %v1421_v37 }
  0x60   : > { %3762 = vmatpush3.bf16.msra.mxu0 %v4024_v3  ;;  %3717 = vmatprep.mubr.bf16.mxu0 %v3208_v5  ;;  %v4664_v3 = vsel %vm4359_vm5, %v3308_v1, %v1806_v16  ;;  %v1808_v5 = vrot.slane %v1806_v16, 4  ;;  %v1430_v63 = vrot.slane %v1428_v15, 5  ;;  %v1438_v29 = vshll.u32 %v3225_v58, 16 }
  0x61   : > { %3763 = vmatprep.subr.bf16.mxu0 %v4026_v22  ;;  %3792 = vmatpush3.bf16.msra.mxu1 %v4021_v51  ;;  %v4032_v51 = vld [vmem:[%s5359_s1 + $0x100] sm:$0xff]   ;;  %v3309_v1 = vrot.slane %v4474_v45, 9  ;;  %v1407_v14 = vsel %vm4243_vm2, %v1402_v44, %v1406_v57  ;;  %v1412_v16 = vrot.slane %v1411_v10, 4  ;;  %v1816_v38 = vrot.slane %v3225_v58, 5  ;;  %v4031_v45 = vld [vmem:[%s5359_s1 + $0x148] sm:$0xff]  }
  0x62   : > { %3793 = vmatprep.subr.bf16.mxu1 %v4025_v55  ;;  %v1810_v17 = vsel %vm4359_vm5, %v1808_v5, %v1809_v27  ;;  %v1435_v28 = vor.u32 %v1434_v50, %v1430_v63  ;;  %v1440_v37 = vrot.slane %v1438_v29, 5  ;;  %v1813_v27 = vrot.slane %v4498_v49, 5 }
  0x63   : > { %3746 = vmatmul.mubr.bf16.gmra.mxu1 %v3265_v42  ;;  %v3332_v60 = vcombine.low %v4664_v3, %v1810_v17  ;;  %v1417_v42 = vsel %vm4243_vm2, %v1412_v16, %v1416_v30  ;;  %v3228_v3 = vld [vmem:[%s4195_s24 + $0x2c] sm:$0x1]  ;;  %v1448_v49 = vrot.slane %v1446_v9, 5  ;;  %v4033_v30 = vld [vmem:[%s5359_s1 + $0x140] sm:$0xff]   ;;  %v1452_v9 = vshll.u32 %v4513_v62, 16 }
  0x64   : > { %3764 = vmatpush3.bf16.msra.mxu0 %v4026_v22  ;;  %v1426_v22 = vrot.slane %v1425_v53, 4  ;;  %3749 = vmatprep.mubr.bf16.mxu1 %v3266_v61  ;;  %v1445_v61 = vrot.slane %v1443_v4, 4  ;;  %v4693_v58 = vsel %vm4359_vm5, %v3309_v1, %v1813_v27  ;;  %v1815_v5 = vrot.slane %v1813_v27, 4  ;;  %v4034_v4 = vld [vmem:[%s5359_s1 + $0x1b8] sm:$0xff]  }
  0x65   : > { %3765 = vmatprep.subr.bf16.mxu0 %v4030_v59  ;;  %3794 = vmatpush3.bf16.msra.mxu1 %v4025_v55  ;;  %v3292_v55 = vcombine.low %v1407_v14, %v1417_v42  ;;  %v1462_v44 = vshll.u32 %v3228_v3, 16  ;;  %v3310_v50 = vrot.slane %v4510_v56, 9  ;;  %v1820_v17 = vrot.slane %v4513_v62, 5  ;;  %v4036_v56 = vld [vmem:[%s5359_s1 + $0x1b0] sm:$0xff]  }
  0x66   : > { %3795 = vmatprep.subr.bf16.mxu1 %v4027_v35  ;;  %v1431_v57 = vsel %vm4243_vm2, %v1426_v22, %v1430_v63  ;;  %v1449_v15 = vor.u32 %v1448_v49, %v1445_v61  ;;  %v4708_v53 = vsel %vm4359_vm5, %v1815_v5, %v1816_v38  ;;  %v3231_v63 = vld [vmem:[%s4195_s24 + $0x38] sm:$0x1]  ;;  %v1472_v27 = vrot.slane %v1470_v13, 5 }
  0x67   : > { %3718 = vmatmul.mubr.bf16.gmra.mxu0 %v3209_v6  ;;  %v1436_v6 = vrot.slane %v1435_v28, 4  ;;  %v1464_v14 = vrot.slane %v1462_v44, 5  ;;  %v1821_v16 = vsel %vm4359_vm5, %v3310_v50, %v1820_v17  ;;  %v1822_v22 = vrot.slane %v1820_v17, 4 }
  0x68   : > { %3766 = vmatpush3.bf16.msra.mxu0 %v4030_v59  ;;  %v1458_v59 = vrot.slane %v1456_v12, 4  ;;  %3769 = vmatprep.mubr.bf16.mxu0 %v3292_v55  ;;  %v3333_v12 = vcombine.low %v4693_v58, %v4708_v53  ;;  %v1450_v1 = vrot.slane %v1449_v15, 4  ;;  %v1823_v28 = vrot.slane %v3228_v3, 5  ;;  %v4038_v15 = vld [vmem:[%s5359_s1 + $0x1a8] sm:$0xff]  }
  0x69   : > { %3767 = vmatprep.subr.bf16.mxu0 %v4032_v51  ;;  %3796 = vmatpush3.bf16.msra.mxu1 %v4027_v35  ;;  %v1441_v10 = vsel %vm4243_vm2, %v1436_v6, %v1440_v37  ;;  %v1454_v35 = vrot.slane %v1452_v9, 5  ;;  %v1476_v42 = vshll.u32 %v4536_v25, 16  ;;  %v1486_v3 = vshll.u32 %v3231_v63, 16 }
  0x6a   : > { %3797 = vmatprep.subr.bf16.mxu1 %v4031_v45  ;;  %v3293_v29 = vcombine.low %v1431_v57, %v1441_v10  ;;  %v1824_v38 = vsel %vm4359_vm5, %v1822_v22, %v1823_v28  ;;  %v1482_v57 = vrot.slane %v1480_v32, 4  ;;  %v1827_v6 = vrot.slane %v4536_v25, 5  ;;  %v4037_v25 = vld [vmem:[%s5359_s1 + $0x1f0] sm:$0xff]  }
  0x6b   : > { %3750 = vmatmul.mubr.bf16.gmra.mxu1 %v3267_v7  ;;  %v1455_v62 = vsel %vm4243_vm2, %v1450_v1, %v1454_v35  ;;  %v1459_v37 = vor.u32 %v1458_v59, %v1454_v35  ;;  %v4035_v7 = vld [vmem:[%s5359_s1 + $0x1f8] sm:$0xff]   ;;  %v3334_v61 = vcombine.low %v1821_v16, %v1824_v38  ;;  %v1478_v49 = vrot.slane %v1476_v42, 5  ;;  %v4040_v35 = vld [vmem:[%s5359_s1 + $0x1a0] sm:$0xff]   ;;  %v3237_v22 = vld [vmem:[%s4195_s24 + $0x50] sm:$0x1] }
  0x6c   : > { %3768 = vmatpush3.bf16.msra.mxu0 %v4032_v51  ;;  %v1469_v51 = vrot.slane %v1467_v0, 4  ;;  %3801 = vmatprep.mubr.bf16.mxu1 %v3332_v60  ;;  %v3311_v60 = vrot.slane %v4517_v8, 9  ;;  %v1488_v55 = vrot.slane %v1486_v3, 5  ;;  %v1830_v58 = vrot.slane %v3231_v63, 5 }
  0x6d   : > { %3817 = vmatprep.subr.bf16.mxu0 %v4034_v4  ;;  %3798 = vmatpush3.bf16.msra.mxu1 %v4031_v45  ;;  %v1460_v0 = vrot.slane %v1459_v37, 4  ;;  %v4739_v45 = vld [vmem:[%s4195_s24 + $0x44] sm:$0x1]  ;;  %v1493_v8 = vrot.slane %v1491_v54, 4  ;;  %v1483_v59 = vor.u32 %v1482_v57, %v1478_v49  ;;  %v1829_v10 = vrot.slane %v1827_v6, 4 }
  0x6e   : > { %3799 = vmatprep.subr.bf16.mxu1 %v4033_v30  ;;  %v1473_v13 = vor.u32 %v1472_v27, %v1469_v51  ;;  %v1828_v44 = vsel %vm4359_vm5, %v3311_v60, %v1827_v6  ;;  %v1500_v54 = vshll.u32 %v4549_v19, 16  ;;  %v1510_v63 = vshll.u32 %v4739_v45, 16 }
  0x6f   : > { %3770 = vmatmul.mubr.bf16.vlgmr.msra.gmra.mxu0 %v3293_v29  ;;  %v1465_v32 = vsel %vm4243_vm2, %v1460_v0, %v1464_v14  ;;  %v1831_v17 = vsel %vm4359_vm5, %v1829_v10, %v1830_v58  ;;  %v3312_v29 = vrot.slane %v4546_v33, 9  ;;  %v4039_v33 = vld [vmem:[%s5359_s1 + $0x1e8] sm:$0xff]   ;;  %v1520_v42 = vrot.slane %v1518_v2, 5 }
  0x70   : > { %3818 = vmatpush3.bf16.msra.mxu0 %v4034_v4  ;;  %v1474_v5 = vrot.slane %v1473_v13, 4  ;;  %v1496_v4 = vrot.slane %v1494_v43, 5  ;;  %v3294_v9 = vcombine.low %v1455_v62, %v1465_v32  ;;  %v1506_v43 = vrot.slane %v1504_v48, 4 }
  0x71   : > { %3819 = vmatprep.subr.bf16.mxu0 %v4036_v56  ;;  %3800 = vmatpush3.bf16.msra.mxu1 %v4033_v30  ;;  %v1484_v30 = vrot.slane %v1483_v59, 4  ;;  %v3335_v1 = vcombine.low %v1828_v44, %v1831_v17  ;;  %v1502_v16 = vrot.slane %v1500_v54, 5  ;;  %v1834_v48 = vrot.slane %v4549_v19, 5 }
  0x72   : > { %3849 = vmatprep.subr.bf16.mxu1 %v4035_v7  ;;  %v1479_v53 = vsel %vm4243_vm2, %v1474_v5, %v1478_v49  ;;  %v1497_v50 = vor.u32 %v1496_v4, %v1493_v8  ;;  %3773 = vmatprep.mubr.bf16.mxu0 %v3294_v9  ;;  %v1517_v62 = vrot.slane %v1515_v52, 4  ;;  %v1524_v52 = vshll.u32 %v4576_v11, 16  ;;  %v4044_v4 = vld [vmem:[%s5359_s1 + $0x190] sm:$0xff]  }
  0x73   : > { %v1489_v28 = vsel %vm4243_vm2, %v1484_v30, %v1488_v55  ;;  %v1507_v51 = vor.u32 %v1506_v43, %v1502_v16  ;;  %v1835_v27 = vsel %vm4359_vm5, %v3312_v29, %v1834_v48  ;;  %v1836_v38 = vrot.slane %v1834_v48, 4 }
  0x74   : > { %3820 = vmatpush3.bf16.msra.mxu0 %v4036_v56  ;;  %3802 = vmatmul.mubr.bf16.vlgmr.msra.gmra.mxu1 %v3333_v12  ;;  %v1498_v14 = vrot.slane %v1497_v50, 4  ;;  %v1512_v12 = vrot.slane %v1510_v63, 5  ;;  %v1837_v56 = vrot.slane %v4739_v45, 5  ;;  %v3295_v37 = vcombine.low %v1479_v53, %v1489_v28  ;;  %v4046_v28 = vld [vmem:[%s5359_s1 + $0x188] sm:$0xff]  }
  0x75   : > { %3821 = vmatprep.subr.bf16.mxu0 %v4038_v15  ;;  %3850 = vmatpush3.bf16.msra.mxu1 %v4035_v7  ;;  %v4042_v7 = vld [vmem:[%s5359_s1 + $0x198] sm:$0xff]   ;;  %v1530_v57 = vrot.slane %v1528_v20, 4  ;;  %v1508_v3 = vrot.slane %v1507_v51, 4  ;;  %v1534_v0 = vshll.u32 %v3237_v22, 16  ;;  %v1841_v13 = vrot.slane %v4576_v11, 5  ;;  %v4041_v20 = vld [vmem:[%s5359_s1 + $0x1e0] sm:$0xff]  }
  0x76   : > { %3805 = vmatprep.mubr.bf16.mxu1 %v3334_v61  ;;  %3851 = vmatprep.subr.bf16.mxu1 %v4037_v25  ;;  %v1503_v19 = vsel %vm4243_vm2, %v1498_v14, %v1502_v16  ;;  %v3313_v61 = vrot.slane %v4560_v34, 9  ;;  %v1838_v60 = vsel %vm4359_vm5, %v1836_v38, %v1837_v56  ;;  %v1521_v45 = vor.u32 %v1520_v42, %v1517_v62  ;;  %v3240_v11 = vld [vmem:[%s4195_s24 + $0x5c] sm:$0x1]  ;;  %v4851_v42 = vld [vmem:[%s4195_s24 + $0x18] sm:$0xf] }
  0x77   : > { %3774 = vmatmul.mubr.bf16.gmra.mxu0 %v3295_v37  ;;  %v1526_v2 = vrot.slane %v1524_v52, 5  ;;  %v1844_v49 = vrot.slane %v3237_v22, 5  ;;  %v1513_v55 = vsel %vm4243_vm2, %v1508_v3, %v1512_v12  ;;  %v3336_v6 = vcombine.low %v1835_v27, %v1838_v60  ;;  %v4854_v52 = vld [vmem:[%s4195_s24 + $0x1c] sm:$0xf] }
  0x78   : > { %3822 = vmatpush3.bf16.msra.mxu0 %v4038_v15  ;;  %v1536_v58 = vrot.slane %v1534_v0, 5  ;;  %v1842_v34 = vsel %vm4359_vm5, %v3313_v61, %v1841_v13  ;;  %v3296_v32 = vcombine.low %v1503_v19, %v1513_v55  ;;  %v1522_v5 = vrot.slane %v1521_v45, 4  ;;  %v4860_v61 = vld [vmem:[%s4195_s24 + $0x20] sm:$0x1] }
  0x79   : > { %3823 = vmatprep.subr.bf16.mxu0 %v4040_v35  ;;  %3852 = vmatpush3.bf16.msra.mxu1 %v4037_v25  ;;  %v1531_v15 = vor.u32 %v1530_v57, %v1526_v2  ;;  %v1843_v8 = vrot.slane %v1841_v13, 4  ;;  %v1541_v25 = vrot.slane %v1539_v46, 4  ;;  %v1544_v9 = vrot.slane %v1542_v31, 5  ;;  %v4043_v46 = vld [vmem:[%s5359_s1 + $0x1d8] sm:$0xff]   ;;  %v4820_v31 = vld [vmem:[%s4195_s24 + $0x68] sm:$0x1] }
  0x7a   : > { %3853 = vmatprep.subr.bf16.mxu1 %v4039_v33  ;;  %v1548_v59 = vshll.u32 %v4600_v23, 16  ;;  %v1554_v44 = vrot.slane %v1552_v18, 4  ;;  %3777 = vmatprep.mubr.bf16.mxu0 %v3296_v32  ;;  %v1527_v10 = vsel %vm4243_vm2, %v1522_v5, %v1526_v2  ;;  %v1558_v54 = vshll.u32 %v3240_v11, 16  ;;  %v4876_v32 = vld [vmem:[%s4195_s24 + $0x24] sm:$0xf] }
  0x7b   : > { %v1532_v53 = vrot.slane %v1531_v15, 4  ;;  %v1845_v50 = vsel %vm4359_vm5, %v1843_v8, %v1844_v49  ;;  %v1545_v18 = vor.u32 %v1544_v9, %v1541_v25  ;;  %v3314_v17 = vrot.slane %v4592_v21, 9  ;;  %v4049_v15 = vld [vmem:[%s5359_s1 + $0x1c0] sm:$0xff]   ;;  %v4886_v9 = vld [vmem:[%s4195_s24 + $0x28] sm:$0xf] }
  0x7c   : > { %3824 = vmatpush3.bf16.msra.mxu0 %v4040_v35  ;;  %3806 = vmatmul.mubr.bf16.gmra.mxu1 %v3335_v1  ;;  %v3337_v43 = vcombine.low %v1842_v34, %v1845_v50  ;;  %v1550_v30 = vrot.slane %v1548_v59, 5  ;;  %v1560_v29 = vrot.slane %v1558_v54, 5  ;;  %v1848_v1 = vrot.slane %v4600_v23, 5  ;;  %v4891_v59 = vld [vmem:[%s5359_s1 + $0x238] sm:$0xff]   ;;  %v4899_v54 = vld [vmem:[%s4195_s24 + $0x30] sm:$0xf] }
  0x7d   : > { %3825 = vmatprep.subr.bf16.mxu0 %v4042_v7  ;;  %3854 = vmatpush3.bf16.msra.mxu1 %v4039_v33  ;;  %v1537_v63 = vsel %vm4243_vm2, %v1532_v53, %v1536_v58  ;;  %v1851_v35 = vrot.slane %v3240_v11, 5  ;;  %v1546_v16 = vrot.slane %v1545_v18, 4  ;;  %v1565_v22 = vrot.slane %v1563_v39, 4  ;;  %v4045_v39 = vld [vmem:[%s5359_s1 + $0x1d0] sm:$0xff]  }
  0x7e   : > { %3855 = vmatprep.subr.bf16.mxu1 %v4041_v20  ;;  %3809 = vmatprep.mubr.bf16.mxu1 %v3336_v6  ;;  %v3297_v14 = vcombine.low %v1527_v10, %v1537_v63  ;;  %v1555_v48 = vor.u32 %v1554_v44, %v1550_v30  ;;  %v1849_v21 = vsel %vm4359_vm5, %v3314_v17, %v1848_v1  ;;  %v1850_v33 = vrot.slane %v1848_v1, 4  ;;  %v4904_v17 = vld [vmem:[%s4195_s24 + $0x34] sm:$0xf] }
  0x7f   : > { %v1568_v23 = vrot.slane %v1566_v41, 5  ;;  %v1572_v12 = vshll.u32 %v4614_v24, 16  ;;  %v1551_v56 = vsel %vm4243_vm2, %v1546_v16, %v1550_v30  ;;  %v1578_v37 = vrot.slane %v1576_v40, 4  ;;  %v4048_v41 = vld [vmem:[%s5359_s1 + $0x180] sm:$0xff]  }
  0x80   : > { %3826 = vmatpush3.bf16.msra.mxu0 %v4042_v7  ;;  %v1556_v62 = vrot.slane %v1555_v48, 4  ;;  %v1582_v19 = vshll.u32 %v4820_v31, 16  ;;  %v1852_v51 = vsel %vm4359_vm5, %v1850_v33, %v1851_v35  ;;  %v3315_v38 = vrot.slane %v4611_v47, 9 }
  0x81   : > { %3827 = vmatprep.subr.bf16.mxu0 %v4044_v4  ;;  %3856 = vmatpush3.bf16.msra.mxu1 %v4041_v20  ;;  %v1569_v27 = vor.u32 %v1568_v23, %v1565_v22  ;;  %v1574_v7 = vrot.slane %v1572_v12, 5  ;;  %v3338_v57 = vcombine.low %v1849_v21, %v1852_v51  ;;  %v1855_v0 = vrot.slane %v4614_v24, 5  ;;  %v4047_v24 = vld [vmem:[%s5359_s1 + $0x1c8] sm:$0xff]  }
  0x82   : > { %3778 = vmatmul.mubr.bf16.gmra.mxu0 %v3297_v14  ;;  %3857 = vmatprep.subr.bf16.mxu1 %v4043_v46  ;;  %v1561_v40 = vsel %vm4243_vm2, %v1556_v62, %v1560_v29  ;;  %v1584_v3 = vrot.slane %v1582_v19, 5  ;;  %v1858_v45 = vrot.slane %v4820_v31, 5  ;;  %v3390_v20 = vcombine.low %v4851_v42, %v4854_v52 }
  0x83   : > { %v3298_v13 = vcombine.low %v1551_v56, %v1561_v40  ;;  %v1570_v60 = vrot.slane %v1569_v27, 4  ;;  %v1579_v47 = vor.u32 %v1578_v37, %v1574_v7  ;;  %v1856_v2 = vsel %vm4359_vm5, %v3315_v38, %v1855_v0  ;;  %v4920_v27 = vld [vmem:[%s4195_s24 + $0x38] sm:$0x1] }
  0x84   : > { %3828 = vmatpush3.bf16.msra.mxu0 %v4044_v4  ;;  %3810 = vmatmul.mubr.bf16.gmra.mxu1 %v3337_v43  ;;  %v1857_v49 = vrot.slane %v1855_v0, 4  ;;  %v2325_v55 = vshrl.u32 %v4851_v42, 16  ;;  %v2328_v34 = vshll.u32 %v4851_v42, 16  ;;  %v2338_v11 = vshrl.u32 %v4854_v52, 16  ;;  %v4929_v0 = vld [vmem:[%s4195_s24 + $0x40] sm:$0xf] }
  0x85   : > { %3829 = vmatprep.subr.bf16.mxu0 %v4046_v28  ;;  %3858 = vmatpush3.bf16.msra.mxu1 %v4043_v46  ;;  %v1575_v6 = vsel %vm4243_vm2, %v1570_v60, %v1574_v7  ;;  %v1580_v58 = vrot.slane %v1579_v47, 4  ;;  %v2334_v4 = vshll.u32 %v4854_v52, 16  ;;  %v2344_v25 = vshll.u32 %v4860_v61, 16  ;;  %v4896_v46 = vld [vmem:[%s4195_s24 + $0x2c] sm:$0x1] }
  0x86   : > { %3859 = vmatprep.subr.bf16.mxu1 %v4045_v39  ;;  %3813 = vmatprep.mubr.bf16.mxu1 %v3338_v57  ;;  %v1859_v5 = vsel %vm4359_vm5, %v1857_v49, %v1858_v45  ;;  %v2327_v8 = vrot.slane %v2325_v55, 4  ;;  %v2330_v53 = vrot.slane %v2328_v34, 5  ;;  %v2340_v50 = vrot.slane %v2338_v11, 4 }
  0x87   : > { %3781 = vmatprep.mubr.bf16.mxu0 %v3298_v13  ;;  %v1585_v44 = vsel %vm4243_vm2, %v1580_v58, %v1584_v3  ;;  %v3339_v10 = vcombine.low %v1856_v2, %v1859_v5  ;;  %v2336_v43 = vrot.slane %v2334_v4, 5  ;;  %v2346_v18 = vrot.slane %v2344_v25, 5  ;;  %v4926_v3 = vld [vmem:[%s4195_s24 + $0x3c] sm:$0xf]  ;;  %v4932_v2 = vld [vmem:[%s4195_s24 + $0x44] sm:$0x1] }
  0x88   : > { %3830 = vmatpush3.bf16.msra.mxu0 %v4046_v28  ;;  %v3299_v31 = vcombine.low %v1575_v6, %v1585_v44  ;;  %v3391_v30 = vcombine.low %v4876_v32, %v4886_v9  ;;  %v2331_v63 = vor.u32 %v2330_v53, %v2327_v8  ;;  %v2349_v29 = vshrl.u32 %v4876_v32, 16  ;;  %v4949_v44 = vld [vmem:[%s4195_s24 + $0x48] sm:$0xf] }
  0x89   : > { %3831 = vmatprep.subr.bf16.mxu0 %v4048_v41  ;;  %3860 = vmatpush3.bf16.msra.mxu1 %v4045_v39  ;;  %v2352_v1 = vshll.u32 %v4876_v32, 16  ;;  %v2362_v35 = vshrl.u32 %v4886_v9, 16  ;;  %v2341_v14 = vor.u32 %v2340_v50, %v2336_v43  ;;  %v2358_v16 = vshll.u32 %v4886_v9, 16 }
  0x8a   : > { %3861 = vmatprep.subr.bf16.mxu1 %v4047_v24  ;;  %3782 = vmatmul.mubr.bf16.gmra.mxu0 %v3299_v31  ;;  %v2368_v48 = vshll.u32 %v4896_v46, 16  ;;  %v3392_v22 = vcombine.low %v4899_v54, %v4904_v17  ;;  %v2332_v28 = vrot.slane %v2331_v63, 4  ;;  %v2351_v21 = vrot.slane %v2349_v29, 4 }
  0x8b   : > { %3833 = vmatprep.mubr.bf16.mxu0 %v3390_v20  ;;  %v2354_v33 = vrot.slane %v2352_v1, 5  ;;  %v2364_v23 = vrot.slane %v2362_v35, 4  ;;  %v2342_v12 = vrot.slane %v2341_v14, 4  ;;  %v2360_v39 = vrot.slane %v2358_v16, 5  ;;  %v4958_v1 = vld [vmem:[%s4195_s24 + $0x4c] sm:$0xf] }
  0x8c   : > { %3832 = vmatpush3.bf16.msra.mxu0 %v4048_v41  ;;  %3814 = vmatmul.mubr.bf16.gmra.mxu1 %v3339_v10  ;;  %v2370_v56 = vrot.slane %v2368_v48, 5  ;;  %v2373_v62 = vshrl.u32 %v4899_v54, 16  ;;  %v2337_v37 = vsel %vm4243_vm2, %v2332_v28, %v2336_v43  ;;  %v2376_v41 = vshll.u32 %v4899_v54, 16  ;;  %v4056_v43 = vld [vmem:[%s5359_s1 + $0x228] sm:$0xff]  }
  0x8d   : > { %3862 = vmatpush3.bf16.msra.mxu1 %v4047_v24  ;;  %3881 = vmatprep.subr.bf16.mxu0 %v4891_v59  ;;  %v2355_v19 = vor.u32 %v2354_v33, %v2351_v21  ;;  %v2386_v51 = vshrl.u32 %v4904_v17, 16  ;;  %v2347_v7 = vsel %vm4243_vm2, %v2342_v12, %v2346_v18  ;;  %v2365_v38 = vor.u32 %v2364_v23, %v2360_v39  ;;  %v4053_v24 = vld [vmem:[%s5359_s1 + $0x230] sm:$0xff]  }
  0x8e   : > { %3863 = vmatprep.subr.bf16.mxu1 %v4049_v15  ;;  %v2375_v40 = vrot.slane %v2373_v62, 4  ;;  %v2382_v57 = vshll.u32 %v4904_v17, 16  ;;  %v3422_v13 = vcombine.low %v2337_v37, %v2347_v7  ;;  %v2378_v47 = vrot.slane %v2376_v41, 5  ;;  %v4973_v12 = vld [vmem:[%s4195_s24 + $0x54] sm:$0xf] }
  0x8f   : > { %v2356_v60 = vrot.slane %v2355_v19, 4  ;;  %v2388_v45 = vrot.slane %v2386_v51, 4  ;;  %v2366_v49 = vrot.slane %v2365_v38, 4  ;;  %v2392_v55 = vshll.u32 %v4920_v27, 16  ;;  %v4982_v38 = vld [vmem:[%s4195_s24 + $0x58] sm:$0xf] }
  0x90   : > { %v2384_v20 = vrot.slane %v2382_v57, 5  ;;  %v3393_v6 = vcombine.low %v4926_v3, %v4929_v0  ;;  %3865 = vmatprep.mubr.bf16.mxu1 %v3422_v13  ;;  %v2379_v34 = vor.u32 %v2378_v47, %v2375_v40  ;;  %v2397_v11 = vshrl.u32 %v4926_v3, 16 }
  0x91   : > { %3864 = vmatpush3.bf16.msra.mxu1 %v4049_v15  ;;  %v2361_v58 = vsel %vm4243_vm2, %v2356_v60, %v2360_v39  ;;  %v2400_v5 = vshll.u32 %v4926_v3, 16  ;;  %v2371_v15 = vsel %vm4243_vm2, %v2366_v49, %v2370_v56  ;;  %v2394_v4 = vrot.slane %v2392_v55, 5 }
  0x92   : > { %3913 = vmatprep.subr.bf16.mxu1 %v4891_v59  ;;  %3834 = vmatmul.mubr.bf16.vlgmr.msra.gmra.mxu0 %v3391_v30  ;;  %v2389_v8 = vor.u32 %v2388_v45, %v2384_v20  ;;  %v2410_v25 = vshrl.u32 %v4929_v0, 16  ;;  %v3423_v10 = vcombine.low %v2361_v58, %v2371_v15  ;;  %v2380_v53 = vrot.slane %v2379_v34, 4 }
  0x93   : > { %3882 = vmatpush3.bf16.msra.mxu0 %v4891_v59  ;;  %3837 = vmatprep.mubr.bf16.mxu0 %v3392_v22  ;;  %v2399_v50 = vrot.slane %v2397_v11, 4  ;;  %v2402_v31 = vrot.slane %v2400_v5, 5  ;;  %v2406_v30 = vshll.u32 %v4929_v0, 16  ;;  %v2416_v29 = vshll.u32 %v4932_v2, 16  ;;  %v4966_v22 = vld [vmem:[%s4195_s24 + $0x50] sm:$0x1] }
  0x94   : > { %3883 = vmatprep.subr.bf16.mxu0 %v4053_v24  ;;  %v2390_v18 = vrot.slane %v2389_v8, 4  ;;  %v2412_v63 = vrot.slane %v2410_v25, 4  ;;  %3866 = vmatmul.mubr.bf16.vlgmr.msra.gmra.mxu1 %v3423_v10  ;;  %v2385_v35 = vsel %vm4243_vm2, %v2380_v53, %v2384_v20  ;;  %v3394_v16 = vcombine.low %v4949_v44, %v4958_v1  ;;  %v4994_v5 = vld [vmem:[%s4195_s24 + $0x5c] sm:$0x1] }
  0x95   : > { %v2403_v14 = vor.u32 %v2402_v31, %v2399_v50  ;;  %v2421_v48 = vshrl.u32 %v4949_v44, 16  ;;  %3921 = vmatpush3.bf16.msra.mxu1 %v4891_v59  ;;  %v2408_v21 = vrot.slane %v2406_v30, 5  ;;  %v2418_v33 = vrot.slane %v2416_v29, 5  ;;  %v4057_v59 = vld [vmem:[%s5359_s1 + $0x220] sm:$0xff]   ;;  %v4060_v50 = vld [vmem:[%s5359_s1 + $0x218] sm:$0xff]  }
  0x96   : > { %v2395_v28 = vsel %vm4243_vm2, %v2390_v18, %v2394_v4  ;;  %v2424_v23 = vshll.u32 %v4949_v44, 16  ;;  %3914 = vmatprep.subr.bf16.mxu1 %v4053_v24  ;;  %v2434_v62 = vshrl.u32 %v4958_v1, 16  ;;  %v2430_v51 = vshll.u32 %v4958_v1, 16  ;;  %v5007_v31 = vld [vmem:[%s4195_s24 + $0x60] sm:$0xf] }
  0x97   : > { %3884 = vmatpush3.bf16.msra.mxu0 %v4053_v24  ;;  %v3424_v39 = vcombine.low %v2385_v35, %v2395_v28  ;;  %v2404_v56 = vrot.slane %v2403_v14, 4  ;;  %v2423_v37 = vrot.slane %v2421_v48, 4  ;;  %v2413_v19 = vor.u32 %v2412_v63, %v2408_v21  ;;  %v5013_v35 = vld [vmem:[%s4195_s24 + $0x64] sm:$0xf] }
  0x98   : > { %3885 = vmatprep.subr.bf16.mxu0 %v4056_v43  ;;  %v2426_v41 = vrot.slane %v2424_v23, 5  ;;  %v2440_v7 = vshll.u32 %v4966_v22, 16  ;;  %v2436_v57 = vrot.slane %v2434_v62, 4  ;;  %v3395_v13 = vcombine.low %v4973_v12, %v4982_v38 }
  0x99   : > { %3869 = vmatprep.mubr.bf16.mxu1 %v3424_v39  ;;  %v2409_v40 = vsel %vm4243_vm2, %v2404_v56, %v2408_v21  ;;  %v2445_v60 = vshrl.u32 %v4973_v12, 16  ;;  %3922 = vmatpush3.bf16.msra.mxu1 %v4053_v24  ;;  %v2414_v47 = vrot.slane %v2413_v19, 4  ;;  %v2432_v49 = vrot.slane %v2430_v51, 5  ;;  %v4061_v19 = vld [vmem:[%s5359_s1 + $0x210] sm:$0xff]   ;;  %v5030_v51 = vld [vmem:[%s4195_s24 + $0x6c] sm:$0xf] }
  0x9a   : > { %3838 = vmatmul.mubr.bf16.gmra.mxu0 %v3393_v6  ;;  %v2427_v45 = vor.u32 %v2426_v41, %v2423_v37  ;;  %v2442_v20 = vrot.slane %v2440_v7, 5  ;;  %3915 = vmatprep.subr.bf16.mxu1 %v4056_v43  ;;  %v2448_v55 = vshll.u32 %v4973_v12, 16  ;;  %v2458_v58 = vshrl.u32 %v4982_v38, 16 }
  0x9b   : > { %3886 = vmatpush3.bf16.msra.mxu0 %v4056_v43  ;;  %v3443_v34 = vrot.slane %v4973_v12, 9  ;;  %v2771_v11 = vrot.slane %v4982_v38, 5  ;;  %v2419_v24 = vsel %vm4243_vm2, %v2414_v47, %v2418_v33  ;;  %3841 = vmatprep.mubr.bf16.mxu0 %v3394_v16  ;;  %v2437_v15 = vor.u32 %v2436_v57, %v2432_v49  ;;  %v5035_v47 = vld [vmem:[%s4195_s24 + $0x70] sm:$0xf] }
  0x9c   : > { %3887 = vmatprep.subr.bf16.mxu0 %v4057_v59  ;;  %v2428_v6 = vrot.slane %v2427_v45, 4  ;;  %v2447_v8 = vrot.slane %v2445_v60, 4  ;;  %v3425_v4 = vcombine.low %v2409_v40, %v2419_v24  ;;  %v2450_v10 = vrot.slane %v2448_v55, 5 }
  0x9d   : > { %v5000_v25 = vrot.slane %v2771_v11, 4  ;;  %v2454_v53 = vshll.u32 %v4982_v38, 16  ;;  %3923 = vmatpush3.bf16.msra.mxu1 %v4056_v43  ;;  %v2438_v30 = vrot.slane %v2437_v15, 4  ;;  %v2460_v63 = vrot.slane %v2458_v58, 4  ;;  %v5019_v43 = vld [vmem:[%s4195_s24 + $0x68] sm:$0x1] }
  0x9e   : > { %v2433_v18 = vsel %vm4243_vm2, %v2428_v6, %v2432_v49  ;;  %v2464_v29 = vshll.u32 %v4994_v5, 16  ;;  %3870 = vmatmul.mubr.bf16.gmra.mxu1 %v3425_v4  ;;  %3916 = vmatprep.subr.bf16.mxu1 %v4057_v59  ;;  %v2451_v14 = vor.u32 %v2450_v10, %v2447_v8  ;;  %v2774_v48 = vrot.slane %v4994_v5, 5  ;;  %v5043_v6 = vld [vmem:[%s4195_s24 + $0x74] sm:$0x1] }
  0x9f   : > { %v2456_v16 = vrot.slane %v2454_v53, 5  ;;  %v3396_v28 = vcombine.low %v5007_v31, %v5013_v35  ;;  %3888 = vmatpush3.bf16.msra.mxu0 %v4057_v59  ;;  %v2443_v21 = vsel %vm4243_vm2, %v2438_v30, %v2442_v20  ;;  %v2469_v23 = vshrl.u32 %v5007_v31, 16  ;;  %v4064_v53 = vld [vmem:[%s5359_s1 + $0x208] sm:$0xff]  }
  0xa0   : > { %v2466_v33 = vrot.slane %v2464_v29, 5  ;;  %v2472_v39 = vshll.u32 %v5007_v31, 16  ;;  %v3426_v56 = vcombine.low %v2433_v18, %v2443_v21  ;;  %v2452_v62 = vrot.slane %v2451_v14, 4  ;;  %3889 = vmatprep.subr.bf16.mxu0 %v4060_v50 }
  0xa1   : > { %v2461_v37 = vor.u32 %v2460_v63, %v2456_v16  ;;  %v2482_v41 = vshrl.u32 %v5013_v35, 16  ;;  %3924 = vmatpush3.bf16.msra.mxu1 %v4057_v59  ;;  %v2471_v7 = vrot.slane %v2469_v23, 4  ;;  %v2478_v57 = vshll.u32 %v5013_v35, 16 }
  0xa2   : > { %3842 = vmatmul.mubr.bf16.gmra.mxu0 %v3395_v13  ;;  %v2474_v40 = vrot.slane %v2472_v39, 5  ;;  %v2488_v60 = vshll.u32 %v5019_v43, 16  ;;  %3873 = vmatprep.mubr.bf16.mxu1 %v3426_v56  ;;  %v2457_v45 = vsel %vm4243_vm2, %v2452_v62, %v2456_v16  ;;  %v3397_v59 = vcombine.low %v5030_v51, %v5035_v47 }
  0xa3   : > { %v2462_v49 = vrot.slane %v2461_v37, 4  ;;  %3917 = vmatprep.subr.bf16.mxu1 %v4060_v50  ;;  %v2484_v20 = vrot.slane %v2482_v41, 4  ;;  %3890 = vmatpush3.bf16.msra.mxu0 %v4060_v50  ;;  %v2480_v55 = vrot.slane %v2478_v57, 5  ;;  %v2493_v24 = vshrl.u32 %v5030_v51, 16  ;;  %v4065_v41 = vld [vmem:[%s5359_s1 + $0x200] sm:$0xff]  }
  0xa4   : > { %3845 = vmatprep.mubr.bf16.mxu0 %v3396_v28  ;;  %v2475_v13 = vor.u32 %v2474_v40, %v2471_v7  ;;  %v2490_v58 = vrot.slane %v2488_v60, 5  ;;  %3891 = vmatprep.subr.bf16.mxu0 %v4061_v19  ;;  %v2496_v8 = vshll.u32 %v5030_v51, 16  ;;  %v2506_v4 = vshrl.u32 %v5035_v47, 16 }
  0xa5   : > { %v2467_v15 = vsel %vm4243_vm2, %v2462_v49, %v2466_v33  ;;  %v2502_v10 = vshll.u32 %v5035_v47, 16  ;;  %3925 = vmatpush3.bf16.msra.mxu1 %v4060_v50  ;;  %v2485_v63 = vor.u32 %v2484_v20, %v2480_v55  ;;  %v2495_v29 = vrot.slane %v2493_v24, 4 }
  0xa6   : > { %v3427_v18 = vcombine.low %v2457_v45, %v2467_v15  ;;  %v2476_v30 = vrot.slane %v2475_v13, 4  ;;  %3918 = vmatprep.subr.bf16.mxu1 %v4061_v19  ;;  %v2498_v14 = vrot.slane %v2496_v8, 5  ;;  %v2508_v28 = vrot.slane %v2506_v4, 4 }
  0xa7   : > { %v2504_v16 = vrot.slane %v2502_v10, 5  ;;  %v2512_v21 = vshll.u32 %v5043_v6, 16  ;;  %3892 = vmatpush3.bf16.msra.mxu0 %v4061_v19  ;;  %v2486_v23 = vrot.slane %v2485_v63, 4  ;;  %v3438_v39 = vrot.slane %v4851_v42, 9 }
  0xa8   : > { %3874 = vmatmul.mubr.bf16.gmra.mxu1 %v3427_v18  ;;  %v2481_v33 = vsel %vm4243_vm2, %v2476_v30, %v2480_v55  ;;  %v2736_v56 = vrot.slane %v4854_v52, 5  ;;  %v2499_v50 = vor.u32 %v2498_v14, %v2495_v29  ;;  %3893 = vmatprep.subr.bf16.mxu0 %v4064_v53  ;;  %v2739_v7 = vrot.slane %v4860_v61, 5 }
  0xa9   : > { %v2509_v62 = vor.u32 %v2508_v28, %v2504_v16  ;;  %v2514_v37 = vrot.slane %v2512_v21, 5  ;;  %3926 = vmatpush3.bf16.msra.mxu1 %v4061_v19  ;;  %v2491_v40 = vsel %vm4243_vm2, %v2486_v23, %v2490_v58  ;;  %v3442_v52 = vrot.slane %v4949_v44, 9 }
  0xaa   : > { %3846 = vmatmul.mubr.bf16.gmra.mxu0 %v3397_v59  ;;  %v2737_v42 = vsel %vm4359_vm5, %v3438_v39, %v2736_v56  ;;  %v2738_v57 = vrot.slane %v2736_v56, 4  ;;  %v3428_v60 = vcombine.low %v2481_v33, %v2491_v40  ;;  %v2500_v45 = vrot.slane %v2499_v50, 4  ;;  %3919 = vmatprep.subr.bf16.mxu1 %v4064_v53 }
  0xab   : > { %v2510_v49 = vrot.slane %v2509_v62, 4  ;;  %v2764_v20 = vrot.slane %v4958_v1, 5  ;;  %3894 = vmatpush3.bf16.msra.mxu0 %v4064_v53  ;;  %v2767_v19 = vrot.slane %v4966_v22, 5  ;;  %v3439_v59 = vrot.slane %v4876_v32, 9 }
  0xac   : > { %v2740_v61 = vsel %vm4359_vm5, %v2738_v57, %v2739_v7  ;;  %v2743_v13 = vrot.slane %v4886_v9, 5  ;;  %3877 = vmatprep.mubr.bf16.mxu1 %v3428_v60  ;;  %v2505_v44 = vsel %vm4243_vm2, %v2500_v45, %v2504_v16  ;;  %3895 = vmatprep.subr.bf16.mxu0 %v4065_v41  ;;  %v2746_v36 = vrot.slane %v4896_v46, 5 }
  0xad   : > { %v2515_v55 = vsel %vm4243_vm2, %v2510_v49, %v2514_v37  ;;  %v3462_v58 = vcombine.low %v2737_v42, %v2740_v61  ;;  %v2766_v1 = vrot.slane %v2764_v20, 4  ;;  %3927 = vmatpush3.bf16.msra.mxu1 %v4064_v53  ;;  %v2765_v15 = vsel %vm4359_vm5, %v3442_v52, %v2764_v20 }
  0xae   : > { %v3429_v24 = vcombine.low %v2505_v44, %v2515_v55  ;;  %v2744_v32 = vsel %vm4359_vm5, %v3439_v59, %v2743_v13  ;;  %v2745_v22 = vrot.slane %v2743_v13, 4  ;;  %3920 = vmatprep.subr.bf16.mxu1 %v4065_v41  ;;  %v2772_v8 = vsel %vm4359_vm5, %v3443_v34, %v2771_v11 }
  0xaf   : > { %3897 = vmatprep.mubr.bf16.mxu0 %v3462_v58  ;;  %v2768_v9 = vsel %vm4359_vm5, %v2766_v1, %v2767_v19  ;;  %v2775_v4 = vsel %vm4359_vm5, %v5000_v25, %v2774_v48  ;;  %3896 = vmatpush3.bf16.msra.mxu0 %v4065_v41  ;;  %v3440_v18 = vrot.slane %v4899_v54, 9  ;;  %v2750_v46 = vrot.slane %v4904_v17, 5 }
  0xb0   : > { %3878 = vmatmul.mubr.bf16.gmra.mxu1 %v3429_v24  ;;  %v3466_v10 = vcombine.low %v2765_v15, %v2768_v9  ;;  %v3467_v53 = vcombine.low %v2772_v8, %v2775_v4  ;;  %v2747_v12 = vsel %vm4359_vm5, %v2745_v22, %v2746_v36  ;;  %v2753_v38 = vrot.slane %v4920_v27, 5 }
  0xb1   : > { %v3444_v34 = vrot.slane %v5007_v31, 9  ;;  %v2778_v11 = vrot.slane %v5013_v35, 5  ;;  %3928 = vmatpush3.bf16.msra.mxu1 %v4065_v41  ;;  %v3463_v5 = vcombine.low %v2744_v32, %v2747_v12  ;;  %v2751_v25 = vsel %vm4359_vm5, %v3440_v18, %v2750_v46 }
  0xb2   : > { %3905 = vmatprep.mubr.bf16.mxu1 %v3466_v10  ;;  %v2752_v48 = vrot.slane %v2750_v46, 4  ;;  %v2781_v54 = vrot.slane %v5019_v43, 5  ;;  %v3441_v63 = vrot.slane %v4926_v3, 9  ;;  %v2757_v27 = vrot.slane %v4929_v0, 5 }
  0xb3   : > { %v2779_v17 = vsel %vm4359_vm5, %v3444_v34, %v2778_v11  ;;  %v2780_v30 = vrot.slane %v2778_v11, 4  ;;  %3898 = vmatmul.mubr.bf16.vlgmr.msra.gmra.mxu0 %v3463_v5  ;;  %v2760_v35 = vrot.slane %v4932_v2, 5  ;;  %v3445_v29 = vrot.slane %v5030_v51, 9 }
  0xb4   : > { %v2754_v31 = vsel %vm4359_vm5, %v2752_v48, %v2753_v38  ;;  %v2785_v14 = vrot.slane %v5035_v47, 5  ;;  %v2758_v28 = vsel %vm4359_vm5, %v3441_v63, %v2757_v27  ;;  %v2759_v3 = vrot.slane %v2757_v27, 4 }
  0xb5   : > { %v3464_v16 = vcombine.low %v2751_v25, %v2754_v31  ;;  %v2782_v43 = vsel %vm4359_vm5, %v2780_v30, %v2781_v54  ;;  %v2788_v33 = vrot.slane %v5043_v6, 5  ;;  %v3127_v6 = vld [vmem:[%s5360_s2] ss:$0 sm:$0xff] }
  0xb6   : > { %v3468_v21 = vcombine.low %v2779_v17, %v2782_v43  ;;  %v2787_v0 = vrot.slane %v2785_v14, 4  ;;  %v2761_v2 = vsel %vm4359_vm5, %v2759_v3, %v2760_v35  ;;  %v2786_v47 = vsel %vm4359_vm5, %v3445_v29, %v2785_v14 }
  0xb7   : > { %3901 = vmatprep.mubr.bf16.mxu0 %v3464_v16  ;;  %v3465_v51 = vcombine.low %v2758_v28, %v2761_v2 }
  0xb8   : > { %3906 = vmatmul.mubr.bf16.vlgmr.msra.gmra.mxu1 %v3467_v53  ;;  %v2789_v23 = vsel %vm4359_vm5, %v2787_v0, %v2788_v33 }
  0xb9   : > { %3909 = vmatprep.mubr.bf16.mxu1 %v3468_v21  ;;  %v3469_v39 = vcombine.low %v2786_v47, %v2789_v23 }
  0xbb   : > { %3902 = vmatmul.mubr.bf16.gmra.mxu0 %v3465_v51 }
  0xc0   : > { %3910 = vmatmul.mubr.bf16.gmra.mxu1 %v3469_v39 }
  0xef   : > { %v3643_v56 = vpop.f32.mrf.mxu0 }
  0xf0   : > { %v444_v50 = vadd.f32 %v3643_v56, %v3127_v6  ;;  %v3675_v62 = vpop.f32.mrf.mxu1 }
  0xf1   : > { %v379_v37 = vpop.f32.mrf.mxu0 }
  0xf2   : > { %v849_v41 = vadd.f32 %v3675_v62, %v444_v50  ;;  %v442_v7 = vadd.f32 %v3127_v6, %v379_v37  ;;  %v784_v40 = vpop.f32.mrf.mxu1 }
  0xf3   : > { %v3644_v42 = vpop.f32.mrf.mxu0 }
  0xf4   : > { %v847_v57 = vadd.f32 %v784_v40, %v442_v7  ;;  %v445_v52 = vadd.f32 %v3644_v42, %v3127_v6  ;;  %v3676_v60 = vpop.f32.mrf.mxu1 }
  0xf5   : > { %v382_v26 = vpop.f32.mrf.mxu0 }
  0xf6   : > { %v850_v45 = vadd.f32 %v3676_v60, %v445_v52  ;;  %v443_v49 = vadd.f32 %v3127_v6, %v382_v26  ;;  %v787_v20 = vpop.f32.mrf.mxu1 }
  0xf7   : > { %v3647_v61 = vpop.f32.mrf.mxu0 }
  0xf8   : > { %v848_v19 = vadd.f32 %v787_v20, %v443_v49  ;;  %v448_v59 = vadd.f32 %v3647_v61, %v3127_v6 }
  0xf9   : > { %v3679_v13 = vpop.f32.mrf.mxu1  ;;  %v395_v44 = vpop.f32.mrf.mxu0 }
  0xfa   : > { %v853_v55 = vadd.f32 %v3679_v13, %v448_v59  ;;  %v446_v58 = vadd.f32 %v3127_v6, %v395_v44 }
  0xfb   : > { %v800_v1 = vpop.f32.mrf.mxu1  ;;  %v3648_v24 = vpop.f32.mrf.mxu0 }
  0xfc   : > { %v851_v15 = vadd.f32 %v800_v1, %v446_v58  ;;  %v449_v32 = vadd.f32 %v3648_v24, %v3127_v6 }
  0xfd   : > { %v3680_v22 = vpop.f32.mrf.mxu1  ;;  %v398_v9 = vpop.f32.mrf.mxu0 }
  0xfe   : > { %v854_v36 = vadd.f32 %v3680_v22, %v449_v32  ;;  %v447_v8 = vadd.f32 %v3127_v6, %v398_v9 }
  0xff   : > { %v803_v4 = vpop.f32.mrf.mxu1  ;;  %v3651_v10 = vpop.f32.mrf.mxu0 }
 0x100   : > { %v852_v53 = vadd.f32 %v803_v4, %v447_v8  ;;  %v452_v18 = vadd.f32 %v3651_v10, %v3127_v6 }
 0x101   : > { %v411_v46 = vpop.f32.mrf.mxu0  ;;  %v3683_v38 = vpop.f32.mrf.mxu1 }
 0x102   : > { %v450_v12 = vadd.f32 %v3127_v6, %v411_v46  ;;  %v857_v11 = vadd.f32 %v3683_v38, %v452_v18 }
 0x103   : > { %v3652_v34 = vpop.f32.mrf.mxu0  ;;  %v816_v25 = vpop.f32.mrf.mxu1 }
 0x104   : > { %v453_v5 = vadd.f32 %v3652_v34, %v3127_v6  ;;  %v855_v54 = vadd.f32 %v816_v25, %v450_v12 }
 0x105   : > { %v414_v48 = vpop.f32.mrf.mxu0  ;;  %v3684_v30 = vpop.f32.mrf.mxu1 }
 0x106   : > { %v451_v17 = vadd.f32 %v3127_v6, %v414_v48  ;;  %v858_v27 = vadd.f32 %v3684_v30, %v453_v5 }
 0x107   : > { %v3655_v63 = vpop.f32.mrf.mxu0  ;;  %v819_v31 = vpop.f32.mrf.mxu1 }
 0x108   : > { %v856_v29 = vadd.f32 %v819_v31, %v451_v17  ;;  %v456_v14 = vadd.f32 %v3655_v63, %v3127_v6 }
 0x109   : > { %v427_v35 = vpop.f32.mrf.mxu0 }
 0x10a   : > { %v454_v43 = vadd.f32 %v3127_v6, %v427_v35 }
 0x10b   : > { %v3656_v16 = vpop.f32.mrf.mxu0  ;;  %v3687_v28 = vpop.f32.mrf.mxu1 }
 0x10c   : > { %v861_v21 = vadd.f32 %v3687_v28, %v456_v14  ;;  %v457_v0 = vadd.f32 %v3656_v16, %v3127_v6 }
 0x10d   : > { %v430_v3 = vpop.f32.mrf.mxu0  ;;  %v832_v33 = vpop.f32.mrf.mxu1 }
 0x10e   : > { %v859_v51 = vadd.f32 %v832_v33, %v454_v43  ;;  %v455_v47 = vadd.f32 %v3127_v6, %v430_v3 }
 0x10f   : > { %v3707_v2 = vpop.f32.mrf.mxu0  ;;  %v3688_v39 = vpop.f32.mrf.mxu1 }
 0x110   : > { %v1126_v23 = vadd.f32 %v3707_v2, %v849_v41  ;;  %v862_v50 = vadd.f32 %v3688_v39, %v457_v0 }
 0x111   : > { %v1061_v56 = vpop.f32.mrf.mxu0  ;;  %v835_v37 = vpop.f32.mrf.mxu1 }
 0x112   : > { %v1124_v62 = vadd.f32 %v1061_v56, %v847_v57  ;;  %v860_v40 = vadd.f32 %v835_v37, %v455_v47 }
 0x113   : > { %v3708_v7 = vpop.f32.mrf.mxu0  ;;  %v3739_v52 = vpop.f32.mrf.mxu1 }
 0x114   : > { %v1127_v42 = vadd.f32 %v3708_v7, %v850_v45  ;;  %v5128_v26 = vadd.f32 %v3739_v52, %v1126_v23 }
 0x115   : > { %v1064_v60 = vpop.f32.mrf.mxu0  ;;  %v1315_v20 = vpop.f32.mrf.mxu1 }
 0x116   : > { %v1125_v49 = vadd.f32 %v1064_v60, %v848_v19  ;;  %v5130_v59 = vadd.f32 %v1315_v20, %v1124_v62 }
 0x117   : > { %v3711_v61 = vpop.f32.mrf.mxu0  ;;  %v3740_v6 = vpop.f32.mrf.mxu1 }
 0x118   : > { %v1130_v13 = vadd.f32 %v3711_v61, %v853_v55  ;;  %v5132_v44 = vadd.f32 %v3740_v6, %v1127_v42 }
 0x119   : > { %v1077_v41 = vpop.f32.mrf.mxu0  ;;  %v1318_v57 = vpop.f32.mrf.mxu1 }
 0x11a   : > { %v1128_v58 = vadd.f32 %v1077_v41, %v851_v15  ;;  %v5134_v24 = vadd.f32 %v1318_v57, %v1125_v49 }
 0x11b   : > { %v3712_v1 = vpop.f32.mrf.mxu0  ;;  %v3743_v32 = vpop.f32.mrf.mxu1 }
 0x11c   : > { %v1131_v45 = vadd.f32 %v3712_v1, %v854_v36  ;;  %v5136_v9 = vadd.f32 %v3743_v32, %v1130_v13 }
 0x11d   : > { %v1080_v22 = vpop.f32.mrf.mxu0  ;;  %v1331_v8 = vpop.f32.mrf.mxu1 }
 0x11e   : > { %v1129_v19 = vadd.f32 %v1080_v22, %v852_v53  ;;  %v5138_v10 = vadd.f32 %v1331_v8, %v1128_v58 }
 0x11f   : > { %v3715_v4 = vpop.f32.mrf.mxu0  ;;  %v3744_v18 = vpop.f32.mrf.mxu1 }
 0x120   : > { %v1134_v55 = vadd.f32 %v3715_v4, %v857_v11  ;;  %v5140_v12 = vadd.f32 %v3744_v18, %v1131_v45 }
 0x121   : > { %v1093_v46 = vpop.f32.mrf.mxu0  ;;  %v1334_v38 = vpop.f32.mrf.mxu1 }
 0x122   : > { %v1132_v15 = vadd.f32 %v1093_v46, %v855_v54  ;;  %v5142_v5 = vadd.f32 %v1334_v38, %v1129_v19 }
 0x123   : > { %v3716_v34 = vpop.f32.mrf.mxu0  ;;  %v3747_v25 = vpop.f32.mrf.mxu1 }
 0x124   : > { %v1135_v36 = vadd.f32 %v3716_v34, %v858_v27  ;;  %v5144_v17 = vadd.f32 %v3747_v25, %v1134_v55 }
 0x125   : > { %v1096_v48 = vpop.f32.mrf.mxu0  ;;  %v1347_v30 = vpop.f32.mrf.mxu1 }
 0x126   : > { %v1133_v53 = vadd.f32 %v1096_v48, %v856_v29  ;;  %v5146_v31 = vadd.f32 %v1347_v30, %v1132_v15 }
 0x127   : > { %v3719_v63 = vpop.f32.mrf.mxu0  ;;  %v3748_v35 = vpop.f32.mrf.mxu1 }
 0x128   : > { %v1138_v11 = vadd.f32 %v3719_v63, %v861_v21  ;;  %v5148_v16 = vadd.f32 %v3748_v35, %v1135_v36 }
 0x129   : > { %v1109_v14 = vpop.f32.mrf.mxu0  ;;  %v1350_v43 = vpop.f32.mrf.mxu1 }
 0x12a   : > { %v1136_v54 = vadd.f32 %v1109_v14, %v859_v51  ;;  %v5150_v3 = vadd.f32 %v1350_v43, %v1133_v53 }
 0x12b   : > { %v3720_v28 = vpop.f32.mrf.mxu0  ;;  %v3751_v0 = vpop.f32.mrf.mxu1 }
 0x12c   : > { %v1139_v27 = vadd.f32 %v3720_v28, %v862_v50  ;;  %v5152_v2 = vadd.f32 %v3751_v0, %v1138_v11 }
 0x12d   : > { %v1112_v33 = vpop.f32.mrf.mxu0  ;;  %v1363_v47 = vpop.f32.mrf.mxu1 }
 0x12e   : > { %v1137_v29 = vadd.f32 %v1112_v33, %v860_v40  ;;  %v5154_v39 = vadd.f32 %v1363_v47, %v1136_v54 }
 0x12f   : > { %v3771_v23 = vpop.f32.mrf.mxu0  ;;  %v3752_v21 = vpop.f32.mrf.mxu1 }
 0x130   : > { %v5156_v62 = vadd.f32 %v3752_v21, %v1139_v27 }
 0x131   : > { %v1717_v56 = vpop.f32.mrf.mxu0  ;;  %v1366_v37 = vpop.f32.mrf.mxu1 }
 0x132   : > { %v5160_v7 = vadd.f32 %v1366_v37, %v1137_v29 }
 0x133   : > { %v5158_v51 = vpop.f32.mrf.mxu0 }
 0x134   : > { %5366 = vst [vmem:[#allocation2_spill] sm:$0xff] %v5160_v7  ;;  %v3803_v42 = vpop.f32.mrf.mxu1 }
 0x135   : > { %v5162_v50 = vpop.f32.mrf.mxu0 }
 0x136   : > { %v5164_v52 = vpop.f32.mrf.mxu1 }
 0x137   : > { %v3775_v40 = vpop.f32.mrf.mxu0 }
 0x138   : > { %v5166_v60 = vpop.f32.mrf.mxu1 }
 0x139   : > { %v5170_v20 = vpop.f32.mrf.mxu0 }
 0x13a   : > { %v5168_v49 = vpop.f32.mrf.mxu1 }
 0x13b   : > { %v5174_v13 = vpop.f32.mrf.mxu0 }
 0x13c   : > { %v5172_v61 = vpop.f32.mrf.mxu1 }
 0x13d   : > { %v5178_v41 = vpop.f32.mrf.mxu0 }
 0x13e   : > { %v5176_v6 = vpop.f32.mrf.mxu1 }
 0x140   : > { %v5180_v58 = vpop.f32.mrf.mxu1 }
 0x142   : > { %v5182_v57 = vpop.f32.mrf.mxu1  ;;  %v3779_v1 = vpop.f32.mrf.mxu0 }
 0x144   : > { %v5184_v45 = vpop.f32.mrf.mxu1  ;;  %v1749_v32 = vpop.f32.mrf.mxu0 }
 0x146   : > { %v5186_v22 = vpop.f32.mrf.mxu1  ;;  %v3780_v19 = vpop.f32.mrf.mxu0 }
 0x148   : > { %v5188_v8 = vpop.f32.mrf.mxu1  ;;  %v5190_v4 = vpop.f32.mrf.mxu0 }
 0x14a   : > { %v5192_v55 = vpop.f32.mrf.mxu1  ;;  %v5194_v18 = vpop.f32.mrf.mxu0 }
 0x14c   : > { %v5196_v46 = vpop.f32.mrf.mxu1  ;;  %v5198_v15 = vpop.f32.mrf.mxu0 }
 0x14e   : > { %v5200_v38 = vpop.f32.mrf.mxu1  ;;  %v5202_v34 = vpop.f32.mrf.mxu0 }
 0x14f   : > { %5367 = vst [vmem:[#allocation3_spill] sm:$0xff] %v5200_v38 }
 0x150   : > { %v5204_v36 = vpop.f32.mrf.mxu1  ;;  %v5206_v25 = vpop.f32.mrf.mxu0 }
 0x151   : > { %5368 = vst [vmem:[#allocation4_spill] sm:$0xff] %v5204_v36  ;;  %5369 = vst [vmem:[#allocation5_spill] sm:$0xff] %v5206_v25 }
 0x152   : > { %v5208_v48 = vpop.f32.mrf.mxu1  ;;  %v3835_v53 = vpop.f32.mrf.mxu0 }
 0x153   : > { %5370 = vst [vmem:[#allocation6_spill] sm:$0xff] %v5208_v48 }
 0x154   : > { %v2245_v30 = vpop.f32.mrf.mxu0  ;;  %v3867_v63 = vpop.f32.mrf.mxu1 }
 0x156   : > { %v3836_v11 = vpop.f32.mrf.mxu0  ;;  %v5210_v35 = vpop.f32.mrf.mxu1 }
 0x158   : > { %v2248_v14 = vpop.f32.mrf.mxu0  ;;  %v5212_v54 = vpop.f32.mrf.mxu1 }
 0x15a   : > { %v5214_v43 = vpop.f32.mrf.mxu0  ;;  %v5216_v28 = vpop.f32.mrf.mxu1 }
 0x15b   : > { %5371 = vst [vmem:[#allocation7_spill] sm:$0xff] %v5216_v28  ;;  %v1783_v28 = vadd.f32 %v5158_v51, %v5132_v44  ;;  %v1784_v44 = vadd.f32 %v5170_v20, %v5138_v10  ;;  %v1785_v10 = vadd.f32 %v5178_v41, %v5142_v5 }
 0x15c   : > { %v5218_v27 = vpop.f32.mrf.mxu0 }
 0x15d   : > { %5372 = vst [vmem:[#allocation8_spill] sm:$0xff] %v5218_v27 }
 0x15e   : > { %v5220_v0 = vpop.f32.mrf.mxu0  ;;  %v5222_v33 = vpop.f32.mrf.mxu1 }
 0x15f   : > { %5373 = vst [vmem:[#allocation9_spill] sm:$0xff] %v5220_v0  ;;  %5374 = vst [vmem:[#allocation10_spill] sm:$0xff] %v5222_v33  ;;  %v1782_v0 = vadd.f32 %v3771_v23, %v5128_v26  ;;  %v1781_v26 = vadd.f32 %v5162_v50, %v5134_v24  ;;  %v1786_v23 = vadd.f32 %v3775_v40, %v5136_v9 }
 0x160   : > { %v5224_v29 = vpop.f32.mrf.mxu0  ;;  %v5227_v47 = vpop.f32.mrf.mxu1  ;;  %v2057_v9 = vadd.f32 %v5166_v60, %v1783_v28  ;;  %v1791_v40 = vadd.f32 %v3780_v19, %v5148_v16  ;;  %v2058_v16 = vadd.f32 %v5176_v6, %v1784_v44 }
 0x161   : > { %5375 = vst [vmem:[#allocation11_spill] sm:$0xff] %v5224_v29  ;;  %5376 = vst [vmem:[#allocation12_spill] sm:$0xff] %v5227_v47  ;;  %v1780_v47 = vadd.f32 %v1717_v56, %v5130_v59 }
 0x162   : > { %v3843_v21 = vpop.f32.mrf.mxu0  ;;  %v5229_v37 = vpop.f32.mrf.mxu1 }
 0x163   : > { %5377 = vst [vmem:[#allocation13_spill] sm:$0xff] %v5229_v37  ;;  %v2054_v56 = vadd.f32 %v5164_v52, %v1780_v47  ;;  %v5386_v47 = vld [vmem:[#allocation2_spill] sm:$0xff] }
 0x164   : > { %v2277_v48 = vpop.f32.mrf.mxu0  ;;  %v5231_v36 = vpop.f32.mrf.mxu1 }
 0x165   : > { %5378 = vst [vmem:[#allocation14_spill] sm:$0xff] %v5231_v36  ;;  %v2056_v36 = vadd.f32 %v3803_v42, %v1782_v0  ;;  %v2308_v52 = vadd.f32 %v2245_v30, %v2054_v56  ;;  %v5385_v0 = vld [vmem:[#allocation3_spill] sm:$0xff] }
 0x166   : > { %v3844_v25 = vpop.f32.mrf.mxu0 }
 0x167   : > { %v2310_v42 = vadd.f32 %v3835_v53, %v2056_v36  ;;  %v2710_v41 = vadd.f32 %v5210_v35, %v2308_v52  ;;  %v5391_v52 = vld [vmem:[#allocation4_spill] sm:$0xff] }
 0x168   : > { %v3875_v7 = vpop.f32.mrf.mxu1  ;;  %v5233_v38 = vpop.f32.mrf.mxu0 }
 0x169   : > { %5379 = vst [vmem:[#allocation15_spill] sm:$0xff] %v5233_v38  ;;  %v1790_v38 = vadd.f32 %v3779_v1, %v5144_v17  ;;  %v1787_v17 = vadd.f32 %v5174_v13, %v5140_v12  ;;  %v2060_v1 = vadd.f32 %v5172_v61, %v1786_v23  ;;  %v1789_v12 = vadd.f32 %v5190_v4, %v5150_v3  ;;  %v5389_v23 = vld [vmem:[#allocation9_spill] sm:$0xff] }
 0x16a   : > { %v5236_v33 = vpop.f32.mrf.mxu1  ;;  %v5238_v29 = vpop.f32.mrf.mxu0  ;;  %v2712_v13 = vadd.f32 %v3867_v63, %v2310_v42  ;;  %v2065_v3 = vadd.f32 %v5188_v8, %v1791_v40  ;;  %v1792_v4 = vadd.f32 %v5198_v15, %v5154_v39  ;;  %v5383_v39 = vld [vmem:[#allocation8_spill] sm:$0xff] }
 0x16b   : > { %5380 = vst [vmem:[#allocation16_spill] sm:$0xff] %v5238_v29  ;;  %v2064_v50 = vadd.f32 %v5184_v45, %v1790_v38  ;;  %v2311_v45 = vadd.f32 %v3836_v11, %v2057_v9  ;;  %v2061_v19 = vadd.f32 %v5180_v58, %v1787_v17  ;;  %v2059_v58 = vadd.f32 %v5182_v57, %v1785_v10 }
 0x16c   : > { %v5242_v37 = vpop.f32.mrf.mxu1  ;;  %v5244_v27 = vpop.f32.mrf.mxu0  ;;  %v2319_v63 = vadd.f32 %v3844_v25, %v2065_v3  ;;  %v1795_v57 = vadd.f32 %v5202_v34, %v5156_v62  ;;  %v2312_v15 = vadd.f32 %v5383_v39, %v2058_v16  ;;  %v5388_v34 = vld [vmem:[#allocation10_spill] sm:$0xff]  ;;  %v5396_v3 = vld [vmem:[#allocation13_spill] sm:$0xff] }
 0x16d   : > { %5381 = vst [vmem:[#allocation17_spill] sm:$0xff] %v5244_v27  ;;  %v1788_v27 = vadd.f32 %v1749_v32, %v5146_v31  ;;  %v2055_v31 = vadd.f32 %v5168_v49, %v1781_v26  ;;  %v2318_v32 = vadd.f32 %v3843_v21, %v2064_v50  ;;  %v1794_v49 = vadd.f32 %v5194_v18, %v5152_v2  ;;  %v5387_v21 = vld [vmem:[#allocation5_spill] sm:$0xff] }
 0x16e   : > { %v5252_v29 = vpop.f32.mrf.mxu1  ;;  %v5254_v59 = vpop.f32.mrf.mxu0  ;;  %v2063_v2 = vadd.f32 %v5192_v55, %v1789_v12  ;;  %v2314_v18 = vadd.f32 %v5214_v43, %v2060_v1  ;;  %v2713_v30 = vadd.f32 %v5212_v54, %v2311_v45  ;;  %v5382_v55 = vld [vmem:[#allocation7_spill] sm:$0xff]  ;;  %v1793_v62 = vadd.f32 %v5387_v21, %v5386_v47  ;;  %v5392_v1 = vld [vmem:[#allocation12_spill] sm:$0xff] }
 0x16f   : > { %v2062_v60 = vadd.f32 %v5186_v22, %v1788_v27  ;;  %v2309_v61 = vadd.f32 %v2248_v14, %v2055_v31  ;;  %v2720_v8 = vadd.f32 %v3875_v7, %v2318_v32  ;;  %v2068_v11 = vadd.f32 %v5196_v46, %v1794_v49  ;;  %v5393_v12 = vld [vmem:[#allocation11_spill] sm:$0xff] }
 0x170   : > { %v5262_v51 = vpop.f32.mrf.mxu1  ;;  %v5264_v24 = vpop.f32.mrf.mxu0  ;;  %v5384_v54 = vld [vmem:[#allocation15_spill] sm:$0xff]  ;;  %v2066_v46 = vadd.f32 %v5385_v0, %v1792_v4  ;;  %v2716_v26 = vadd.f32 %v5388_v34, %v2314_v18  ;;  %v2315_v56 = vadd.f32 %v5389_v23, %v2061_v19  ;;  %v2069_v31 = vadd.f32 %v5391_v52, %v1795_v57  ;;  %v5397_v18 = vld [vmem:[#allocation14_spill] sm:$0xff] }
 0x171   : > { %v2316_v6 = vadd.f32 %v2277_v48, %v2062_v60  ;;  %v2711_v35 = vadd.f32 %v5382_v55, %v2309_v61  ;;  %v2317_v7 = vadd.f32 %v5384_v54, %v2063_v2  ;;  %v2714_v10 = vadd.f32 %v5392_v1, %v2312_v15  ;;  %v5395_v61 = vld [vmem:[#allocation6_spill] sm:$0xff] }
 0x172   : > { %v5275_v20 = vpop.f32.mrf.mxu1  ;;  %v5390_v17 = vld [vmem:[#allocation16_spill] sm:$0xff]  ;;  %v2313_v60 = vadd.f32 %v5393_v12, %v2059_v58  ;;  %v2323_v2 = vadd.f32 %v5254_v59, %v2069_v31 }
 0x173   : > { %v3899_v5 = vpop.f32.mrf.mxu0  ;;  %v2718_v28 = vadd.f32 %v5236_v33, %v2316_v6  ;;  %v2721_v33 = vadd.f32 %v5242_v37, %v2319_v63  ;;  %v2322_v9 = vadd.f32 %v5390_v17, %v2068_v11  ;;  %v2719_v32 = vadd.f32 %v5252_v29, %v2317_v7 }
 0x174   : > { %v5282_v38 = vpop.f32.mrf.mxu1  ;;  %v2986_v22 = vadd.f32 %v3899_v5, %v2712_v13  ;;  %v5394_v16 = vld [vmem:[#allocation17_spill] sm:$0xff]  ;;  %v2067_v5 = vadd.f32 %v5395_v61, %v1793_v62 }
 0x175   : > { %v2921_v53 = vpop.f32.mrf.mxu0  ;;  %v2320_v37 = vadd.f32 %v5394_v16, %v2066_v46  ;;  %v2724_v58 = vadd.f32 %v5262_v51, %v2322_v9  ;;  %v2725_v55 = vadd.f32 %v5282_v38, %v2323_v2 }
 0x176   : > { %v5296_v36 = vpop.f32.mrf.mxu1  ;;  %3002 = vst [vmem:[%s5287_s21 + $0x10] sm:$0xff] %v2986_v22  ;;  %v2984_v48 = vadd.f32 %v2921_v53, %v2710_v41  ;;  %v2717_v41 = vadd.f32 %v5396_v3, %v2315_v56  ;;  %v2715_v53 = vadd.f32 %v5397_v18, %v2313_v60 }
 0x177   : > { %v3900_v43 = vpop.f32.mrf.mxu0  ;;  %v2722_v63 = vadd.f32 %v5275_v20, %v2320_v37 }
 0x178   : > { %v3907_v14 = vpop.f32.mrf.mxu1  ;;  %3000 = vst [vmem:[%s5287_s21] sm:$0xff] %v2984_v48  ;;  %v2987_v27 = vadd.f32 %v3900_v43, %v2713_v30  ;;  %v2321_v48 = vadd.f32 %v5264_v24, %v2067_v5 }
 0x179   : > { %v2994_v25 = vadd.f32 %v3907_v14, %v2720_v8  ;;  %v2924_v44 = vpop.f32.mrf.mxu0 }
 0x17a   : > { %v2953_v42 = vpop.f32.mrf.mxu1  ;;  %3003 = vst [vmem:[%s5287_s21 + $0x18] sm:$0xff] %v2987_v27  ;;  %v2985_v40 = vadd.f32 %v2924_v44, %v2711_v35  ;;  %v2723_v20 = vadd.f32 %v5296_v36, %v2321_v48 }
 0x17b   : > { %3010 = vst [vmem:[%s5287_s21 + $0x50] sm:$0xff] %v2994_v25  ;;  %v2992_v50 = vadd.f32 %v2953_v42, %v2718_v28  ;;  %v3903_v45 = vpop.f32.mrf.mxu0 }
 0x17c   : > { %v3908_v13 = vpop.f32.mrf.mxu1  ;;  %3001 = vst [vmem:[%s5287_s21 + $0x8] sm:$0xff] %v2985_v40  ;;  %v2990_v49 = vadd.f32 %v3903_v45, %v2716_v26 }
 0x17d   : > { %3008 = vst [vmem:[%s5287_s21 + $0x40] sm:$0xff] %v2992_v50  ;;  %v2995_v19 = vadd.f32 %v3908_v13, %v2721_v33  ;;  %v2937_v22 = vpop.f32.mrf.mxu0 }
 0x17e   : > { %v2956_v6 = vpop.f32.mrf.mxu1  ;;  %3006 = vst [vmem:[%s5287_s21 + $0x30] sm:$0xff] %v2990_v49  ;;  %v2988_v4 = vadd.f32 %v2937_v22, %v2714_v10 }
 0x17f   : > { %3011 = vst [vmem:[%s5287_s21 + $0x58] sm:$0xff] %v2995_v19  ;;  %v2993_v29 = vadd.f32 %v2956_v6, %v2719_v32  ;;  %v3904_v8 = vpop.f32.mrf.mxu0 }
 0x180   : > { %v3911_v30 = vpop.f32.mrf.mxu1  ;;  %3004 = vst [vmem:[%s5287_s21 + $0x20] sm:$0xff] %v2988_v4  ;;  %v2991_v59 = vadd.f32 %v3904_v8, %v2717_v41 }
 0x181   : > { %3009 = vst [vmem:[%s5287_s21 + $0x48] sm:$0xff] %v2993_v29  ;;  %v2998_v51 = vadd.f32 %v3911_v30, %v2724_v58  ;;  %v2940_v57 = vpop.f32.mrf.mxu0 }
 0x182   : > { %v2969_v11 = vpop.f32.mrf.mxu1  ;;  %3007 = vst [vmem:[%s5287_s21 + $0x38] sm:$0xff] %v2991_v59  ;;  %v2989_v39 = vadd.f32 %v2940_v57, %v2715_v53 }
 0x183   : > { %3014 = vst [vmem:[%s5287_s21 + $0x70] sm:$0xff] %v2998_v51  ;;  %v2996_v35 = vadd.f32 %v2969_v11, %v2722_v63 }
 0x184   : > { %v3912_v15 = vpop.f32.mrf.mxu1  ;;  %3005 = vst [vmem:[%s5287_s21 + $0x28] sm:$0xff] %v2989_v39 }
 0x185   : > { %3012 = vst [vmem:[%s5287_s21 + $0x60] sm:$0xff] %v2996_v35  ;;  %v2999_v24 = vadd.f32 %v3912_v15, %v2725_v55 }
 0x186   : > { %v2972_v14 = vpop.f32.mrf.mxu1 }
 0x187   : > { %3015 = vst [vmem:[%s5287_s21 + $0x78] sm:$0xff] %v2999_v24  ;;  %v2997_v43 = vadd.f32 %v2972_v14, %v2723_v20 }
 0x189   : > { %3013 = vst [vmem:[%s5287_s21 + $0x68] sm:$0xff] %v2997_v43 }
 0x18a PF: > { %s13_s16 = sadd.s32 1, %s4104_s16   ;;  %s5398_s12 = smov %s4096_s14 }
 0x18b   : > { %p10_p7 = scmp.ge.s32.totalorder %s13_s16, 6   ;;  %s5399_s13 = smov %s4100_s15 }
 0x18c   : > { %s5400_s14 = smov %s5403_s17  ;;  %s5401_s15 = smov %s5407_s18 }
 0x18d   :  { %12 = sbr.rel (!%p10_p7) target bundleno = 3 (0x3), region = 73 }

</bundles_post_ra>
